<compile_context>
chip_gen: v6e
topology: v6e:2x2x1
jax: 0.10.0
libtpu: 0.0.40
codegen_flags: <defaults>
</compile_context>

<pallas_src>
import jax
import jax.numpy as jnp
from jax.experimental import pallas as pl
from jax.experimental.pallas import tpu as pltpu


def linear_kernel(x_ref, w_ref, b_ref, o_ref):
    """One (tm, N) output slab: y = x @ W + b, W stored MXU-native [K, N] bf16."""
    x_bf16 = x_ref[...].astype(jnp.bfloat16)           # in-kernel cast (VPU), no wrapper pass
    acc = jnp.dot(
        x_bf16,                                         # (tm, K) bf16
        w_ref[...],                                     # (K,  N) bf16, MXU-native layout
        preferred_element_type=jnp.float32,             # f32 accumulation
    )                                                   # (tm, N) f32
    o_ref[...] = (acc + b_ref[...]).astype(o_ref.dtype)


def prepare_linear_params(weight, bias):
    """One-time parameter prep (would live at module init for persistent params):
    torch-layout [N, K] weight -> MXU-native bf16 [K, N]; bias -> f32 row."""
    N, K = weight.shape
    w_kn = jnp.asarray(weight).T.astype(jnp.bfloat16)           # [K, N] bf16
    b_row = jnp.asarray(bias).reshape(1, N).astype(jnp.float32)  # [1, N] f32
    return w_kn, b_row


def pallas_linear(x, w_kn, b_row, *, tm=96):
    """x: [B, S, K] f32, w_kn: [K, N] bf16 (pre-transposed), b_row: [1, N] f32."""
    B, S, K = x.shape
    Kw, N = w_kn.shape
    assert Kw == K
    M = B * S

    # Metadata-only reshape; x stays f32 in HBM (cast happens inside the kernel).
    x2 = x.reshape(M, K)

    # tm multiple of 16 keeps bf16 sublane packing clean after the in-kernel cast.
    assert tm % 16 == 0
    grid_m = pl.cdiv(M, tm)
    m_pad = grid_m * tm
    if m_pad != M:
        # Cold path for shapes that don't divide; harmless (bias on garbage rows
        # is trimmed below).  For M=384, tm=96 this is never taken.
        x2 = jnp.pad(x2, ((0, m_pad - M), (0, 0)))

    cost = pl.CostEstimate(
        flops=2 * m_pad * N * K,
        transcendentals=0,
        bytes_accessed=m_pad * K * 4 + K * N * 2 + N * 4 + m_pad * N * 4,
    )

    out = pl.pallas_call(
        linear_kernel,
        out_shape=jax.ShapeDtypeStruct((m_pad, N), x.dtype),
        grid_spec=pltpu.PrefetchScalarGridSpec(
            num_scalar_prefetch=0,
            grid=(grid_m,),
            in_specs=[
                pl.BlockSpec((tm, K), lambda i: (i, 0)),   # x slab (f32)
                pl.BlockSpec((K, N), lambda i: (0, 0)),    # full weight [K, N] bf16 (resident)
                pl.BlockSpec((1, N), lambda i: (0, 0)),    # bias row
            ],
            out_specs=pl.BlockSpec((tm, N), lambda i: (i, 0)),
        ),
        compiler_params=pltpu.CompilerParams(
            dimension_semantics=("parallel",),
        ),
        cost_estimate=cost,
    )(x2, w_kn, b_row)

    if m_pad != M:
        out = out[:M]
    return out.reshape(B, S, N)


def reference_linear(x, weight, bias):
    return jnp.einsum("bsk,nk->bsn", x, weight) + bias


def reference_linear_bf16(x, weight, bias):
    # Same bf16 operand rounding as the kernel, f32 accumulation.
    return (
        jnp.einsum(
            "bsk,nk->bsn",
            x.astype(jnp.bfloat16),
            weight.astype(jnp.bfloat16),
            preferred_element_type=jnp.float32,
        )
        + bias
    )


if __name__ == "__main__":
    key = jax.random.PRNGKey(0)
    kx, kw, kb = jax.random.split(key, 3)

    B, S, H = 1, 384, 768  # matches M: Linear(768 -> 768) on [1, 384, 768]
    x = jax.random.normal(kx, (B, S, H), dtype=jnp.float32)
    # Deterministic init mimicking nn.Linear default (uniform(-1/sqrt(H), 1/sqrt(H)))
    bound = 1.0 / jnp.sqrt(jnp.float32(H))
    weight = jax.random.uniform(kw, (H, H), jnp.float32, -bound, bound)  # torch [N, K]
    bias = jax.random.uniform(kb, (H,), jnp.float32, -bound, bound)

    # One-time parameter prep (outside the hot path).
    w_kn, b_row = prepare_linear_params(weight, bias)
    jax.block_until_ready((w_kn, b_row))

    y = pallas_linear(x, w_kn, b_row)
    jax.block_until_ready(y)
    assert y.shape == (B, S, H)

    # Tight check vs. a reference with identical bf16 operand rounding.
    y_ref_bf16 = reference_linear_bf16(x, weight, bias)
    assert jnp.allclose(y, y_ref_bf16, atol=1e-2, rtol=1e-2)

    # Loose check vs. the full-f32 reference (bf16 operands, f32 accumulation).
    # TODO(synk): if exact f32 parity with PyTorch is required, keep f32 operands
    # (MXU multi-pass) instead of bf16 casting.
    y_ref = reference_linear(x, weight, bias)
    assert jnp.allclose(y, y_ref, atol=1e-1, rtol=1e-1)

    print("KERNEL_OK")
</pallas_src>

<mosaic_0001>
module attributes {stable_mosaic.version = 11 : i64} {
  func.func @linear_kernel(%arg0: i32, %arg1: memref<96x768xf32, #tpu.memory_space<vmem>>, %arg2: memref<768x768xbf16, #tpu.memory_space<vmem>>, %arg3: memref<1x768xf32, #tpu.memory_space<vmem>>, %arg4: memref<96x768xf32, #tpu.memory_space<vmem>>) attributes {dimension_semantics = [#tpu.dimension_semantics<parallel>], iteration_bounds = array<i64: 4>, scalar_prefetch = 0 : i64, scratch_operands = 0 : i64, tpu.core_type = #tpu.core_type<tc>, window_params = [{transform_indices = @transform_0, window_bounds = array<i64: 96, 768>}, {pipeline_mode = #tpu.pipeline_mode<synchronous>, transform_indices = @transform_1, window_bounds = array<i64: 768, 768>}, {pipeline_mode = #tpu.pipeline_mode<synchronous>, transform_indices = @transform_2, window_bounds = array<i64: 1, 768>}, {transform_indices = @transform_3, window_bounds = array<i64: 96, 768>}]} {
    %c0 = arith.constant 0 : index
    %c0_0 = arith.constant 0 : index
    %0 = vector.load %arg1[%c0, %c0_0] : memref<96x768xf32, #tpu.memory_space<vmem>>, vector<96x768xf32>
    %1 = arith.truncf %0 : vector<96x768xf32> to vector<96x768xbf16>
    %c0_1 = arith.constant 0 : index
    %c0_2 = arith.constant 0 : index
    %2 = vector.load %arg2[%c0_1, %c0_2] : memref<768x768xbf16, #tpu.memory_space<vmem>>, vector<768x768xbf16>
    %cst = arith.constant dense<0.000000e+00> : vector<96x768xf32>
    %3 = tpu.matmul %1, %2, %cst {dimension_numbers = #tpu.dot_dimension_numbers<[1], [0], [0], [1], [0, 0, 1, 1], [], []>} : vector<96x768xbf16>, vector<768x768xbf16>, vector<96x768xf32> -> vector<96x768xf32>
    %c0_3 = arith.constant 0 : index
    %c0_4 = arith.constant 0 : index
    %4 = vector.load %arg3[%c0_3, %c0_4] : memref<1x768xf32, #tpu.memory_space<vmem>>, vector<1x768xf32>
    %5 = vector.broadcast %4 : vector<1x768xf32> to vector<96x768xf32>
    %6 = arith.addf %3, %5 : vector<96x768xf32>
    %c0_5 = arith.constant 0 : index
    %c0_6 = arith.constant 0 : index
    %7 = vector.load %arg4[%c0_5, %c0_6] : memref<96x768xf32, #tpu.memory_space<vmem>>, vector<96x768xf32>
    tpu.vector_store %arg4[%c0_5, %c0_6], %6 {strides = array<i32>} : memref<96x768xf32, #tpu.memory_space<vmem>>, vector<96x768xf32>,
    return
  }
  func.func @transform_0(%arg0: i32) -> (i32, i32) {
    %c0_i32 = arith.constant 0 : i32
    %c0_i32_0 = arith.constant 0 : i32
    return %arg0, %c0_i32 : i32, i32
  }
  func.func @transform_1(%arg0: i32) -> (i32, i32) {
    %c0_i32 = arith.constant 0 : i32
    %c0_i32_0 = arith.constant 0 : i32
    %c0_i32_1 = arith.constant 0 : i32
    return %c0_i32, %c0_i32_0 : i32, i32
  }
  func.func @transform_2(%arg0: i32) -> (i32, i32) {
    %c0_i32 = arith.constant 0 : i32
    %c0_i32_0 = arith.constant 0 : i32
    %c0_i32_1 = arith.constant 0 : i32
    return %c0_i32, %c0_i32_0 : i32, i32
  }
  func.func @transform_3(%arg0: i32) -> (i32, i32) {
    %c0_i32 = arith.constant 0 : i32
    %c0_i32_0 = arith.constant 0 : i32
    return %arg0, %c0_i32 : i32, i32
  }
}

</mosaic_0001>

<bundles_post_ra>
// kernel: tpu_custom_call.1
= control target key start
LH: loop header
LB: loop body
LE: loop exit
PB: predicated region body
PF: predicated region fallthrough
CT: control target
= control target key end

     0   :  { %8 = vsyncpa [#allocation3], 0  ;;  %s5048_s0 = inlined_call_operand.hbm [shape: f32[384,768], index: 0, kind: input, shape index: {}]   ;;  %s5049_s1 = inlined_call_operand.hbm [shape: bf16[768,768], index: 1, kind: input, shape index: {}]   ;;  %s5050_s2 = inlined_call_operand.hbm [shape: f32[1,768], index: 2, kind: input, shape index: {}]   ;;  %s5051_s3 = inlined_call_operand.hbm [shape: f32[384,768], index: 3, kind: output, shape index: {}]  }
   0x1   :  { %10 = vsyncpa [#allocation3 + $0x1], 0 }
   0x2   :  { %11 = vsyncpa [#allocation6], 0 }
   0x3   :  { %12 = vsyncpa [#allocation4], 0 }
   0x4   :  { %14 = vsyncpa [#allocation4 + $0x1], 0  ;;  %s4126_s12 = smov 0   ;;  %s4128_s13 = smov 0  }
   0x5   :  { %s4130_s14 = smov 0   ;;  %s4132_s15 = smov 0  }
   0x6 LB: > { %s4147_s16 = sadd.s32 4294967295, %s4094_s15   ;;  %s3103_s17 = sadd.s32 4294967294, %s4094_s15   ;;  %s4094_s15 = sphi %s4132_s15, %s5086_s15   ;;  %s4090_s14 = sphi %s4130_s14, %s5085_s14   ;;  %s4086_s13 = sphi %s4128_s13, %s5084_s13   ;;  %s4082_s12 = sphi %s4126_s12, %s5083_s12  }
   0x7   : > { %p40_p0 = scmp.ne.s32.totalorder %s4086_s13, %s4082_s12  ;;  %p5052_p1 = scmp.eq.s32.totalorder %s4147_s16, 0 }
   0x8   : > { %p112_p3 = scmp.eq.s32.totalorder %s3103_s17, 3  ;;  %p3104_p5 = scmp.ge.s32.totalorder %s4094_s15, 1 }
   0x9   : > { %p4156_p4 = por %p5052_p1, %p40_p0  ;;  %p119_p7 = scmp.lt.s32.totalorder %s4094_s15, 5 }
   0xa   : > { %p4161_p6 = por %p112_p3, %p40_p0  ;;  %s4096_s21 = smov [#allocation5]  }
   0xb   : > { %s5060_s18 = scalar_select %p4156_p4, 1, 0 }
   0xc   : > { %s5061_s19 = scalar_select %p4161_p6, 1, 0 }
   0xd   : > { %p4166_p8 = pnand %p3104_p5, %p119_p7  ;;  %s131_s22 = sshll.u32 %s4096_s21, 4  ;;  %s132_s22 = int_to_ptr.vmem [resolvable:$true] %s131_s22 }
   0xe   : > { %s4097_s24 = smov [#allocation7]   ;;  %s3957_s26 = scalar_lea.vmem %s132_s22, 36864 }
   0xf   : > { %s5062_s20 = scalar_select %p4166_p8, 1, 0 }
  0x10   : > { %p3451_p9 = pneg %p4166_p8  ;;  %s145_s25 = sshll.u32 %s4097_s24, 4  ;;  %s146_s25 = int_to_ptr.vmem [resolvable:$true] %s145_s25 }
  0x11   : > { %p3958_p12 = scmp.ne.s32.totalorder %s132_s22, %s3957_s26  ;;  %p3965_p3 = scmp.lt.s32.totalorder %s132_s22, %s132_s22 }
  0x12   : > { %p4174_p10 = pnand %p3451_p9, %p5052_p1  ;;  %p3966_p5 = scmp.lt.s32.totalorder %s3957_s26, %s3957_s26 }
  0x14   : > { %p3948_p11 = pneg %p4174_p10  ;;  %p3967_p7 = por %p3966_p5, %p3965_p3 }
  0x16   : > { %p3960_p13 = pnand %p3958_p12, %p3948_p11 }
  0x18   : > { %p3961_p0 = pneg %p3960_p13 }
  0x1a   : > { %p3968_p9 = pnand %p3967_p7, %p3961_p0 }
  0x1c   : > { %3971 = shalt.err (!%p3968_p9)
}
  0x1d   : > { %s4098_s27 = smov 384   ;;  %s4099_s28 = smov 24  }
  0x1e   : > { %3454 = dma.hbm_to_vmem [thread:$0]  (!%p4174_p10), %s5049_s1, 36864, %s132_s22, [#allocation6], %s4098_s27, %s4098_s27, %s4099_s28  }
  0x1f   : > { %s3983_s4 = scalar_lea.vmem %s146_s25, 96  ;;  %p3991_p2 = scmp.lt.s32.totalorder %s146_s25, %s146_s25 }
  0x20   : > { %p3984_p1 = scmp.ne.s32.totalorder %s146_s25, %s3983_s4  ;;  %p3992_p6 = scmp.lt.s32.totalorder %s3983_s4, %s3983_s4 }
  0x22   : > { %p3986_p12 = pnand %p3984_p1, %p3948_p11  ;;  %p3993_p3 = por %p3992_p6, %p3991_p2 }
  0x24   : > { %p3987_p13 = pneg %p3986_p12 }
  0x26   : > { %p3994_p0 = pnand %p3993_p3, %p3987_p13 }
  0x28   : > { %3997 = shalt.err (!%p3994_p0)
}
  0x29   : > { %3457 = dma.hbm_to_vmem [thread:$0]  (!%p4174_p10), %s5050_s2, 96, %s146_s25, [#allocation6]  }
  0x2a   : > { %s4197_s7 = sadd.s32 1, %s4094_s15   ;;  %s27_s9 = sadd.s32 1, %s4090_s14 }
  0x2b   : > { %s24_s8 = ssub.s32 %s4094_s15, %s4197_s7  ;;  %p34_p2 = scmp.ne.s32.totalorder %s4090_s14, %s4086_s13 }
  0x2c   : > { %p25_p1 = scmp.eq.s32.totalorder %s24_s8, 0  ;;  %p35_p6 = scmp.eq.s32.totalorder %s4094_s15, 0 }
  0x2d   : > { %p3468_p11 = scmp.lt.s32.totalorder %s4094_s15, 4  ;;  %p5064_p7 = scmp.eq.s32.totalorder %s4147_s16, 3 }
  0x2e   : > { %s4207_s10 = scalar_select %p25_p1, %s4090_s14, %s27_s9  }
  0x2f   : > { %p36_p5 = por %p35_p6, %p34_p2  ;;  %p4211_p9 = por %p5064_p7, %p34_p2 }
  0x30   : > { %s156_s17 = sand.u32 1, %s4090_s14   ;;  %s3469_s21 = smul.u32 9216, %s4094_s15 }
  0x31   : > { %s5065_s11 = scalar_select %p4211_p9, 1, 0 }
  0x32   : > { %s3435_s22 = smul.u32 576, %s156_s17  ;;  %s4220_s25 = scalar_lea.hbm %s5048_s0, %s3469_s21 }
  0x33   : > { %p4222_p10 = pnand %p3468_p11, %p36_p5  ;;  %s4228_s29 = scalar_lea.sflag [#allocation3], %s156_s17 }
  0x34   : > { %s160_s27 = scalar_lea.vmem [#allocation2], %s3435_s22  ;;  %s3998_s30 = scalar_lea.hbm %s4220_s25, 9216 }
  0x35   : > { %s168_s28 = sshll.u32 %s160_s27, 4  ;;  %p3999_p12 = scmp.ne.s32.totalorder %s4220_s25, %s3998_s30  ;;  %s4226_s28 = int_to_ptr.vmem [resolvable:$true] %s168_s28 }
  0x36   : > { %p4000_p13 = pneg %p4222_p10  ;;  %s4003_s6 = scalar_lea.hbm %s5048_s0, 36864 }
  0x37   : > { %p4004_p1 = scmp.lt.s32.totalorder %s4220_s25, %s5048_s0  ;;  %p4005_p2 = scmp.lt.s32.totalorder %s4003_s6, %s3998_s30 }
  0x38   : > { %p4001_p3 = pnand %p4000_p13, %p3999_p12 }
  0x39   : > { %p4006_p6 = por %p4005_p2, %p4004_p1 }
  0x3a   : > { %p4002_p0 = pneg %p4001_p3 }
  0x3c   : > { %p4007_p11 = pnand %p4006_p6, %p4002_p0 }
  0x3e   : > { %4010 = shalt.err (!%p4007_p11)
}
  0x3f   : > { %s4011_s17 = scalar_lea.vmem %s4226_s28, 9216  ;;  %s4100_s21 = smov [#allocation2]  }
  0x40   : > { %p4012_p5 = scmp.ne.s32.totalorder %s4226_s28, %s4011_s17  ;;  %s4016_s22 = sshll.u32 %s4100_s21, 4  ;;  %s4017_s22 = int_to_ptr.vmem [resolvable:$false] %s4016_s22 }
  0x41   : > { %s4018_s23 = scalar_lea.vmem %s4017_s22, 18432  ;;  %p4019_p3 = scmp.lt.s32.totalorder %s4226_s28, %s4017_s22 }
  0x42   : > { %p4014_p7 = pnand %p4012_p5, %p4000_p13  ;;  %p4020_p9 = scmp.lt.s32.totalorder %s4018_s23, %s4011_s17 }
  0x44   : > { %p4015_p12 = pneg %p4014_p7  ;;  %p4021_p4 = por %p4020_p9, %p4019_p3 }
  0x46   : > { %p4022_p8 = pnand %p4021_p4, %p4015_p12 }
  0x48   : > { %4025 = shalt.err (!%p4022_p8)
}
  0x49   : > { %s4101_s24 = smov 768   ;;  %s4102_s27 = smov 48  }
  0x4a   : > { %3461 = dma.hbm_to_vmem [thread:$0]  (!%p4222_p10), %s4220_s25, 9216, %s4226_s28, %s4228_s29, %s4101_s24, %s4101_s24, %s4102_s27  }
  0x4b   : > { %p5067_p13 = scmp.ne.s32.totalorder %s5062_s20, 0 }
  0x4d   : > { %180 = sbr.rel (%p5067_p13) target bundleno = 643 (0x283), region = 32 }
  0x52   : > { %s4252_s30 = sand.u32 1, %s4086_s13   ;;  %p5068_p4 = scmp.ne.s32.totalorder %s5060_s18, 0 }
  0x53   : > { %s3437_s4 = smul.u32 576, %s4252_s30  ;;  %s183_s5 = scalar_lea.sflag [#allocation3], %s4252_s30 }
  0x55   : > { %s4258_s6 = scalar_lea.vmem [#allocation2], %s3437_s4 }
  0x56   : > { %4069 = dma.done.wait (%p5068_p4), %s183_s5, 9216  }
  0x57   : > { %4071 = vsyncadd (%p5068_p4), %s183_s5, 4294958080  ;;  %p5069_p8 = scmp.eq.s32.totalorder %s4147_s16, 0 }
  0x59   : > { %4073 = dma.done.wait (%p5069_p8), [#allocation6], 36960   ;;  %p5070_p9 = pmov %p5069_p8 }
  0x5a   : > { %v3514_v0 = vld [vmem:[#allocation5 + $0x154] ss:$24 sps:$4 sm:$0xff]   ;;  %v3518_v2 = vld [vmem:[#allocation5 + $0x150] ss:$24 sps:$4 sm:$0xff]   ;;  %v3520_v4 = vld [vmem:[#allocation5 + $0x124] ss:$24 sps:$4 sm:$0xff]  }
  0x5b   : > { %4075 = vsyncadd (%p5070_p9), [#allocation6], 4294930336  ;;  %v3516_v1 = vld [vmem:[#allocation5 + $0x454] ss:$24 sps:$4 sm:$0xff]   ;;  %2087 = vmatprep.subr.bf16.mxu0 %v3514_v0  ;;  %v3519_v3 = vld [vmem:[#allocation5 + $0x450] ss:$24 sps:$4 sm:$0xff]  }
  0x5c   : > { %2180 = vmatprep.subr.bf16.mxu1 %v3516_v1  ;;  %2088 = vmatpush1.bf16.msra.mxu0 %v3518_v2  ;;  %v3522_v5 = vld [vmem:[#allocation5 + $0x424] ss:$24 sps:$4 sm:$0xff]   ;;  %v3524_v6 = vld [vmem:[#allocation5 + $0x120] ss:$24 sps:$4 sm:$0xff]   ;;  %v3526_v8 = vld [vmem:[#allocation5 + $0xf4] ss:$24 sps:$4 sm:$0xff]  }
  0x5d   : > { %2181 = vmatpush1.bf16.msra.mxu1 %v3519_v3  ;;  %2089 = vmatprep.subr.bf16.mxu0 %v3520_v4  ;;  %v3525_v7 = vld [vmem:[#allocation5 + $0x420] ss:$24 sps:$4 sm:$0xff]   ;;  %v3528_v9 = vld [vmem:[#allocation5 + $0x3f4] ss:$24 sps:$4 sm:$0xff]   ;;  %v3530_v10 = vld [vmem:[#allocation5 + $0xf0] ss:$24 sps:$4 sm:$0xff]  }
  0x5e   : > { %2182 = vmatprep.subr.bf16.mxu1 %v3522_v5  ;;  %v3531_v11 = vld [vmem:[#allocation5 + $0x3f0] ss:$24 sps:$4 sm:$0xff]   ;;  %v3532_v12 = vld [vmem:[#allocation5 + $0xc4] ss:$24 sps:$4 sm:$0xff]   ;;  %v3536_v14 = vld [vmem:[#allocation5 + $0xc0] ss:$24 sps:$4 sm:$0xff]  }
  0x5f   : > { %v3534_v13 = vld [vmem:[#allocation5 + $0x3c4] ss:$24 sps:$4 sm:$0xff]   ;;  %v3537_v15 = vld [vmem:[#allocation5 + $0x3c0] ss:$24 sps:$4 sm:$0xff]   ;;  %v3538_v16 = vld [vmem:[#allocation5 + $0x94] ss:$24 sps:$4 sm:$0xff]  }
  0x60   : > { %2090 = vmatpush1.bf16.msra.mxu0 %v3524_v6  ;;  %v3540_v17 = vld [vmem:[#allocation5 + $0x394] ss:$24 sps:$4 sm:$0xff]   ;;  %v3542_v18 = vld [vmem:[#allocation5 + $0x90] ss:$24 sps:$4 sm:$0xff]   ;;  %v3544_v20 = vld [vmem:[#allocation5 + $0x64] ss:$24 sps:$4 sm:$0xff]  }
  0x61   : > { %2183 = vmatpush1.bf16.msra.mxu1 %v3525_v7  ;;  %2091 = vmatprep.subr.bf16.mxu0 %v3526_v8  ;;  %v3543_v19 = vld [vmem:[#allocation5 + $0x390] ss:$24 sps:$4 sm:$0xff]   ;;  %v3546_v21 = vld [vmem:[#allocation5 + $0x364] ss:$24 sps:$4 sm:$0xff]   ;;  %v3548_v22 = vld [vmem:[#allocation5 + $0x60] ss:$24 sps:$4 sm:$0xff]  }
  0x62   : > { %2184 = vmatprep.subr.bf16.mxu1 %v3528_v9  ;;  %v3549_v23 = vld [vmem:[#allocation5 + $0x360] ss:$24 sps:$4 sm:$0xff]   ;;  %v3550_v24 = vld [vmem:[#allocation5 + $0x34] ss:$24 sps:$4 sm:$0xff]   ;;  %v3554_v26 = vld [vmem:[#allocation5 + $0x30] ss:$24 sps:$4 sm:$0xff]  }
  0x63   : > { %v3552_v25 = vld [vmem:[#allocation5 + $0x334] ss:$24 sps:$4 sm:$0xff]   ;;  %v3555_v27 = vld [vmem:[#allocation5 + $0x330] ss:$24 sps:$4 sm:$0xff]   ;;  %v3556_v28 = vld [vmem:[#allocation5 + $0x4] ss:$24 sps:$4 sm:$0xff]  }
  0x64   : > { %2092 = vmatpush1.bf16.msra.mxu0 %v3530_v10  ;;  %v3558_v29 = vld [vmem:[#allocation5 + $0x304] ss:$24 sps:$4 sm:$0xff]   ;;  %v3560_v30 = vld [vmem:[#allocation5] ss:$24 sps:$4 sm:$0xff]   ;;  %v3562_v32 = vld [vmem:[#allocation5 + $0x2d4] ss:$24 sps:$4 sm:$0xff]  }
  0x65   : > { %2185 = vmatpush1.bf16.msra.mxu1 %v3531_v11  ;;  %2093 = vmatprep.subr.bf16.mxu0 %v3532_v12  ;;  %v3561_v31 = vld [vmem:[#allocation5 + $0x300] ss:$24 sps:$4 sm:$0xff]   ;;  %v3564_v33 = vld [vmem:[#allocation5 + $0x5d4] ss:$24 sps:$4 sm:$0xff]   ;;  %v3566_v34 = vld [vmem:[#allocation5 + $0x2d0] ss:$24 sps:$4 sm:$0xff]  }
  0x66   : > { %2186 = vmatprep.subr.bf16.mxu1 %v3534_v13  ;;  %v3567_v35 = vld [vmem:[#allocation5 + $0x5d0] ss:$24 sps:$4 sm:$0xff]   ;;  %v3568_v36 = vld [vmem:[#allocation5 + $0x2a4] ss:$24 sps:$4 sm:$0xff]   ;;  %v3572_v38 = vld [vmem:[#allocation5 + $0x2a0] ss:$24 sps:$4 sm:$0xff]  }
  0x67   : > { %v3570_v37 = vld [vmem:[#allocation5 + $0x5a4] ss:$24 sps:$4 sm:$0xff]   ;;  %v3573_v39 = vld [vmem:[#allocation5 + $0x5a0] ss:$24 sps:$4 sm:$0xff]   ;;  %v3574_v40 = vld [vmem:[#allocation5 + $0x274] ss:$24 sps:$4 sm:$0xff]  }
  0x68   : > { %2094 = vmatpush1.bf16.msra.mxu0 %v3536_v14  ;;  %v3576_v41 = vld [vmem:[#allocation5 + $0x574] ss:$24 sps:$4 sm:$0xff]   ;;  %v3578_v42 = vld [vmem:[#allocation5 + $0x270] ss:$24 sps:$4 sm:$0xff]   ;;  %v3580_v44 = vld [vmem:[#allocation5 + $0x244] ss:$24 sps:$4 sm:$0xff]  }
  0x69   : > { %2187 = vmatpush1.bf16.msra.mxu1 %v3537_v15  ;;  %2095 = vmatprep.subr.bf16.mxu0 %v3538_v16  ;;  %v3579_v43 = vld [vmem:[#allocation5 + $0x570] ss:$24 sps:$4 sm:$0xff]   ;;  %v3582_v45 = vld [vmem:[#allocation5 + $0x544] ss:$24 sps:$4 sm:$0xff]   ;;  %v3584_v50 = vld [vmem:[#allocation5 + $0x240] ss:$24 sps:$4 sm:$0xff]  }
  0x6a   : > { %2188 = vmatprep.subr.bf16.mxu1 %v3540_v17  ;;  %v220_v46 = vld [vmem:[%s4258_s6 + $0x8] sm:$0xff]  ;;  %v226_v47 = vld [vmem:[%s4258_s6 + $0x38] sm:$0xff]  ;;  %v219_v6 = vld [vmem:[%s4258_s6] sm:$0xff]  ;;  %s4641_s18 = scalar_lea.vmem [#allocation8], %s3437_s4  ;;  %s3472_s20 = smul.u32 9216, %s4147_s16 }
  0x6b   : > { %v222_v48 = vld [vmem:[%s4258_s6 + $0x18] sm:$0xff]  ;;  %v228_v49 = vld [vmem:[%s4258_s6 + $0x48] sm:$0xff]  ;;  %v4272_v53 = vpack.c.bf16 %v226_v47, %v220_v46  ;;  %v225_v7 = vld [vmem:[%s4258_s6 + $0x30] sm:$0xff]  ;;  %s3011_s25 = sshll.u32 %s4641_s18, 4  ;;  %s2997_s29 = scalar_lea.sflag [#allocation4], %s4252_s30  ;;  %s5002_s25 = int_to_ptr.vmem [resolvable:$true] %s3011_s25 }
  0x6c   : > { %2096 = vmatpush1.bf16.msra.mxu0 %v3542_v18  ;;  %v3585_v51 = vld [vmem:[#allocation5 + $0x540] ss:$24 sps:$4 sm:$0xff]   ;;  %v3586_v52 = vld [vmem:[#allocation5 + $0x214] ss:$24 sps:$4 sm:$0xff]   ;;  %v4274_v54 = vpack.c.bf16 %v228_v49, %v222_v48  ;;  %v3590_v56 = vld [vmem:[#allocation5 + $0x210] ss:$24 sps:$4 sm:$0xff]   ;;  %v4284_v14 = vpack.c.bf16 %v225_v7, %v219_v6  ;;  %s5000_s28 = scalar_lea.hbm %s5051_s3, %s3472_s20 }
  0x6d   : > { %2189 = vmatpush1.bf16.msra.mxu1 %v3543_v19  ;;  %2097 = vmatprep.subr.bf16.mxu0 %v3544_v20  ;;  %v3588_v55 = vld [vmem:[#allocation5 + $0x514] ss:$24 sps:$4 sm:$0xff]   ;;  %v3591_v57 = vld [vmem:[#allocation5 + $0x510] ss:$24 sps:$4 sm:$0xff]   ;;  %v3592_v58 = vld [vmem:[#allocation5 + $0x1e4] ss:$24 sps:$4 sm:$0xff]  }
  0x6e   : > { %2190 = vmatprep.subr.bf16.mxu1 %v3546_v21  ;;  %2119 = vmatprep.mubr.bf16.mxu0 %v4272_v53  ;;  %v3594_v59 = vld [vmem:[#allocation5 + $0x4e4] ss:$24 sps:$4 sm:$0xff]   ;;  %v3596_v60 = vld [vmem:[#allocation5 + $0x1e0] ss:$24 sps:$4 sm:$0xff]   ;;  %v3598_v62 = vld [vmem:[#allocation5 + $0x1b4] ss:$24 sps:$4 sm:$0xff]  }
  0x6f   : > { %2212 = vmatprep.mubr.bf16.mxu1 %v4274_v54  ;;  %v3597_v61 = vld [vmem:[#allocation5 + $0x4e0] ss:$24 sps:$4 sm:$0xff]   ;;  %v3600_v63 = vld [vmem:[#allocation5 + $0x4b4] ss:$24 sps:$4 sm:$0xff]   ;;  %v3602_v0 = vld [vmem:[#allocation5 + $0x1b0] ss:$24 sps:$4 sm:$0xff]  }
  0x70   : > { %2098 = vmatpush1.bf16.msra.mxu0 %v3548_v22  ;;  %v3603_v1 = vld [vmem:[#allocation5 + $0x4b0] ss:$24 sps:$4 sm:$0xff]   ;;  %v3604_v2 = vld [vmem:[#allocation5 + $0x184] ss:$24 sps:$4 sm:$0xff]   ;;  %v3608_v4 = vld [vmem:[#allocation5 + $0x180] ss:$24 sps:$4 sm:$0xff]  }
  0x71   : > { %2191 = vmatpush1.bf16.msra.mxu1 %v3549_v23  ;;  %2099 = vmatprep.subr.bf16.mxu0 %v3550_v24  ;;  %v3606_v3 = vld [vmem:[#allocation5 + $0x484] ss:$24 sps:$4 sm:$0xff]   ;;  %v3609_v5 = vld [vmem:[#allocation5 + $0x480] ss:$24 sps:$4 sm:$0xff]   ;;  %v221_v8 = vld [vmem:[%s4258_s6 + $0x10] sm:$0xff]  ;;  %s4026_s8 = scalar_lea.vmem %s5002_s25, 9216 }
  0x72   : > { %2192 = vmatprep.subr.bf16.mxu1 %v3552_v25  ;;  %v227_v9 = vld [vmem:[%s4258_s6 + $0x40] sm:$0xff]  ;;  %v3612_v10 = vld [vmem:[#allocation5 + $0x754] ss:$24 sps:$4 sm:$0xff]   ;;  %v238_v13 = vld [vmem:[%s4258_s6 + $0x98] sm:$0xff]  ;;  %p4027_p10 = scmp.ne.s32.totalorder %s5002_s25, %s4026_s8  ;;  %p5081_p0 = scmp.ne.s32.totalorder %s5065_s11, 0 }
  0x73   : > { %v3615_v11 = vld [vmem:[#allocation5 + $0x15c] ss:$24 sps:$4 sm:$0xff]   ;;  %v232_v12 = vld [vmem:[%s4258_s6 + $0x68] sm:$0xff]  ;;  %v4286_v15 = vpack.c.bf16 %v227_v9, %v221_v8  ;;  %v3613_v19 = vld [vmem:[#allocation5 + $0x158] ss:$24 sps:$4 sm:$0xff]   ;;  %s4103_s9 = smov [#allocation8]  }
  0x74   : > { %2100 = vmatpush1.bf16.msra.mxu0 %v3554_v26  ;;  %v234_v16 = vld [vmem:[%s4258_s6 + $0x78] sm:$0xff]  ;;  %v240_v17 = vld [vmem:[%s4258_s6 + $0xa8] sm:$0xff]  ;;  %v4290_v23 = vpack.c.bf16 %v238_v13, %v232_v12  ;;  %v243_v47 = vld [vmem:[%s4258_s6 + $0xc0] sm:$0xff]  ;;  %p4028_p1 = pnand %p4027_p10, %p5081_p0  ;;  %s4030_s17 = sshll.u32 %s4103_s9, 4  ;;  %s4031_s17 = int_to_ptr.vmem [resolvable:$false] %s4030_s17 }
  0x75   : > { %2193 = vmatpush1.bf16.msra.mxu1 %v3555_v27  ;;  %2101 = vmatprep.subr.bf16.mxu0 %v3556_v28  ;;  %v3610_v18 = vld [vmem:[#allocation5 + $0x750] ss:$24 sps:$4 sm:$0xff]   ;;  %v3618_v20 = vld [vmem:[#allocation5 + $0x724] ss:$24 sps:$4 sm:$0xff]   ;;  %v3616_v22 = vld [vmem:[#allocation5 + $0x720] ss:$24 sps:$4 sm:$0xff]   ;;  %v4292_v24 = vpack.c.bf16 %v240_v17, %v234_v16  ;;  %p4033_p6 = scmp.lt.s32.totalorder %s5002_s25, %s4031_s17 }
  0x76   : > { %2194 = vmatprep.subr.bf16.mxu1 %v3558_v29  ;;  %v3621_v21 = vld [vmem:[#allocation5 + $0x12c] ss:$24 sps:$4 sm:$0xff]   ;;  %v3619_v25 = vld [vmem:[#allocation5 + $0x128] ss:$24 sps:$4 sm:$0xff]   ;;  %v237_v28 = vld [vmem:[%s4258_s6 + $0x90] sm:$0xff]  ;;  %p4029_p2 = pneg %p4028_p1  ;;  %s4032_s21 = scalar_lea.vmem %s4031_s17, 18432 }
  0x77   : > { %v3624_v26 = vld [vmem:[#allocation5 + $0x6f4] ss:$24 sps:$4 sm:$0xff]   ;;  %v231_v27 = vld [vmem:[%s4258_s6 + $0x60] sm:$0xff]  ;;  %v270_v16 = vld [vmem:[%s4258_s6 + $0x198] sm:$0xff]  ;;  %p4034_p11 = scmp.lt.s32.totalorder %s4032_s21, %s4026_s8 }
  0x78   : > { %2102 = vmatpush1.bf16.msra.mxu0 %v3560_v30  ;;  %v233_v29 = vld [vmem:[%s4258_s6 + $0x70] sm:$0xff]  ;;  %v239_v30 = vld [vmem:[%s4258_s6 + $0xa0] sm:$0xff]  ;;  %v276_v17 = vld [vmem:[%s4258_s6 + $0x1c8] sm:$0xff] }
  0x79   : > { %2195 = vmatpush1.bf16.msra.mxu1 %v3561_v31  ;;  %2103 = vmatprep.subr.bf16.mxu0 %v3562_v32  ;;  %v3627_v31 = vld [vmem:[#allocation5 + $0xfc] ss:$24 sps:$4 sm:$0xff]   ;;  %v244_v32 = vld [vmem:[%s4258_s6 + $0xc8] sm:$0xff]  ;;  %v263_v8 = vld [vmem:[%s4258_s6 + $0x160] sm:$0xff]  ;;  %p4035_p5 = por %p4034_p11, %p4033_p6 }
  0x7a   : > { %2196 = vmatprep.subr.bf16.mxu1 %v3564_v33  ;;  %v250_v33 = vld [vmem:[%s4258_s6 + $0xf8] sm:$0xff]  ;;  %v3636_v46 = vld [vmem:[#allocation5 + $0x694] ss:$24 sps:$4 sm:$0xff]  }
  0x7b   : > { %v249_v48 = vld [vmem:[%s4258_s6 + $0xf0] sm:$0xff]  ;;  %p4036_p7 = pnand %p4035_p5, %p4029_p2 }
  0x7c   : > { %2104 = vmatpush2.bf16.msra.mxu0 %v3566_v34  ;;  %v4304_v34 = vpack.c.bf16 %v237_v28, %v231_v27  ;;  %v245_v49 = vld [vmem:[%s4258_s6 + $0xd0] sm:$0xff]  ;;  %v3655_v27 = vld [vmem:[#allocation5 + $0x8] ss:$24 sps:$4 sm:$0xff]  }
  0x7d   : > { %2197 = vmatpush2.bf16.msra.mxu1 %v3567_v35  ;;  %2105 = vmatprep.subr.bf16.mxu0 %v3568_v36  ;;  %v4306_v35 = vpack.c.bf16 %v239_v30, %v233_v29  ;;  %v246_v36 = vld [vmem:[%s4258_s6 + $0xd8] sm:$0xff]  ;;  %v261_v6 = vld [vmem:[%s4258_s6 + $0x150] sm:$0xff]  ;;  %v267_v29 = vld [vmem:[%s4258_s6 + $0x180] sm:$0xff] }
  0x7e   : > { %2198 = vmatprep.subr.bf16.mxu1 %v3570_v37  ;;  %v252_v37 = vld [vmem:[%s4258_s6 + $0x108] sm:$0xff]  ;;  %v257_v7 = vld [vmem:[%s4258_s6 + $0x130] sm:$0xff] }
  0x7f   : > { %v3651_v9 = vld [vmem:[#allocation5 + $0x3c] ss:$24 sps:$4 sm:$0xff]   ;;  %v4346_v13 = vpack.c.bf16 %v263_v8, %v257_v7  ;;  %v3681_v7 = vld [vmem:[#allocation5 + $0x24c] ss:$24 sps:$4 sm:$0xff]  }
  0x80   : > { %2106 = vmatpush2.bf16.msra.mxu0 %v3572_v38  ;;  %v3622_v38 = vld [vmem:[#allocation5 + $0x6f0] ss:$24 sps:$4 sm:$0xff]   ;;  %v3660_v28 = vld [vmem:[#allocation5 + $0x8d4] ss:$24 sps:$4 sm:$0xff]  }
  0x81   : > { %2199 = vmatpush2.bf16.msra.mxu1 %v3573_v39  ;;  %2107 = vmatprep.subr.bf16.mxu0 %v3574_v40  ;;  %v3625_v39 = vld [vmem:[#allocation5 + $0xf8] ss:$24 sps:$4 sm:$0xff]   ;;  %v3630_v40 = vld [vmem:[#allocation5 + $0x6c4] ss:$24 sps:$4 sm:$0xff]  }
  0x82   : > { %2200 = vmatprep.subr.bf16.mxu1 %v3576_v41  ;;  %v3633_v41 = vld [vmem:[#allocation5 + $0xcc] ss:$24 sps:$4 sm:$0xff]   ;;  %v273_v30 = vld [vmem:[%s4258_s6 + $0x1b0] sm:$0xff] }
  0x84   : > { %2108 = vmatpush2.bf16.msra.mxu0 %v3578_v42  ;;  %v3628_v42 = vld [vmem:[#allocation5 + $0x6c0] ss:$24 sps:$4 sm:$0xff]  }
  0x85   : > { %2201 = vmatpush2.bf16.msra.mxu1 %v3579_v43  ;;  %2109 = vmatprep.subr.bf16.mxu0 %v3580_v44  ;;  %v4310_v43 = vpack.c.bf16 %v250_v33, %v244_v32  ;;  %v4312_v44 = vpack.c.bf16 %v252_v37, %v246_v36  ;;  %v275_v32 = vld [vmem:[%s4258_s6 + $0x1c0] sm:$0xff]  ;;  %v3663_v33 = vld [vmem:[#allocation5 + $0x2dc] ss:$24 sps:$4 sm:$0xff]   ;;  %v3658_v36 = vld [vmem:[#allocation5 + $0x8d0] ss:$24 sps:$4 sm:$0xff]  }
  0x86   : > { %2202 = vmatprep.subr.bf16.mxu1 %v3582_v45  ;;  %v3631_v45 = vld [vmem:[#allocation5 + $0xc8] ss:$24 sps:$4 sm:$0xff]   ;;  %v3661_v37 = vld [vmem:[#allocation5 + $0x2d8] ss:$24 sps:$4 sm:$0xff]  }
  0x88   : > { %2110 = vmatpush2.bf16.msra.mxu0 %v3584_v50  ;;  %v251_v50 = vld [vmem:[%s4258_s6 + $0x100] sm:$0xff] }
  0x89   : > { %2203 = vmatpush2.bf16.msra.mxu1 %v3585_v51  ;;  %2111 = vmatprep.subr.bf16.mxu0 %v3586_v52  ;;  %v3639_v51 = vld [vmem:[#allocation5 + $0x9c] ss:$24 sps:$4 sm:$0xff]   ;;  %v256_v52 = vld [vmem:[%s4258_s6 + $0x128] sm:$0xff] }
  0x8a   : > { %2204 = vmatprep.subr.bf16.mxu1 %v3588_v55  ;;  %v262_v55 = vld [vmem:[%s4258_s6 + $0x158] sm:$0xff] }
  0x8c   : > { %2112 = vmatpush2.bf16.msra.mxu0 %v3590_v56  ;;  %v4324_v56 = vpack.c.bf16 %v249_v48, %v243_v47  ;;  %v3669_v47 = vld [vmem:[#allocation5 + $0x2ac] ss:$24 sps:$4 sm:$0xff]   ;;  %v3664_v48 = vld [vmem:[#allocation5 + $0x8a0] ss:$24 sps:$4 sm:$0xff]  }
  0x8d   : > { %2205 = vmatpush2.bf16.msra.mxu1 %v3591_v57  ;;  %2113 = vmatprep.subr.bf16.mxu0 %v3592_v58  ;;  %v4326_v57 = vpack.c.bf16 %v251_v50, %v245_v49  ;;  %v258_v58 = vld [vmem:[%s4258_s6 + $0x138] sm:$0xff]  ;;  %v3667_v49 = vld [vmem:[#allocation5 + $0x2a8] ss:$24 sps:$4 sm:$0xff]  }
  0x8e   : > { %2206 = vmatprep.subr.bf16.mxu1 %v3594_v59  ;;  %v264_v59 = vld [vmem:[%s4258_s6 + $0x168] sm:$0xff] }
  0x90   : > { %2114 = vmatpush2.bf16.msra.mxu0 %v3596_v60  ;;  %v3634_v60 = vld [vmem:[#allocation5 + $0x690] ss:$24 sps:$4 sm:$0xff]  }
  0x91   : > { %2207 = vmatpush2.bf16.msra.mxu1 %v3597_v61  ;;  %2115 = vmatprep.subr.bf16.mxu0 %v3598_v62  ;;  %v3637_v61 = vld [vmem:[#allocation5 + $0x98] ss:$24 sps:$4 sm:$0xff]   ;;  %v3642_v62 = vld [vmem:[#allocation5 + $0x664] ss:$24 sps:$4 sm:$0xff]  }
  0x92   : > { %2208 = vmatprep.subr.bf16.mxu1 %v3600_v63  ;;  %v3645_v63 = vld [vmem:[#allocation5 + $0x6c] ss:$24 sps:$4 sm:$0xff]  }
  0x94   : > { %2116 = vmatpush2.bf16.msra.mxu0 %v3602_v0  ;;  %v3640_v0 = vld [vmem:[#allocation5 + $0x660] ss:$24 sps:$4 sm:$0xff]  }
  0x95   : > { %2209 = vmatpush2.bf16.msra.mxu1 %v3603_v1  ;;  %2117 = vmatprep.subr.bf16.mxu0 %v3604_v2  ;;  %v4330_v1 = vpack.c.bf16 %v262_v55, %v256_v52  ;;  %v4332_v2 = vpack.c.bf16 %v264_v59, %v258_v58  ;;  %v285_v55 = vld [vmem:[%s4258_s6 + $0x210] sm:$0xff]  ;;  %v287_v59 = vld [vmem:[%s4258_s6 + $0x220] sm:$0xff] }
  0x96   : > { %2210 = vmatprep.subr.bf16.mxu1 %v3606_v3  ;;  %v3643_v3 = vld [vmem:[#allocation5 + $0x68] ss:$24 sps:$4 sm:$0xff]   ;;  %v281_v58 = vld [vmem:[%s4258_s6 + $0x1f0] sm:$0xff] }
  0x98   : > { %2118 = vmatpush2.bf16.msra.mxu0 %v3608_v4  ;;  %v3648_v4 = vld [vmem:[#allocation5 + $0x634] ss:$24 sps:$4 sm:$0xff]  }
  0x99   : > { %2211 = vmatpush2.bf16.msra.mxu1 %v3609_v5  ;;  %2273 = vmatprep.subr.bf16.mxu0 %v3612_v10  ;;  %v255_v5 = vld [vmem:[%s4258_s6 + $0x120] sm:$0xff]  ;;  %v268_v10 = vld [vmem:[%s4258_s6 + $0x188] sm:$0xff] }
  0x9a   : > { %2366 = vmatprep.subr.bf16.mxu1 %v3615_v11  ;;  %v274_v11 = vld [vmem:[%s4258_s6 + $0x1b8] sm:$0xff]  ;;  %v4344_v12 = vpack.c.bf16 %v261_v6, %v255_v5 }
  0x9b   : > { %2120 = vmatmul.mubr.bf16.vlgmr.msra.gmra.mxu0 %v4284_v14  ;;  %v230_v5 = vld [vmem:[%s4258_s6 + $0x58] sm:$0xff] }
  0x9c   : > { %2213 = vmatmul.mubr.bf16.vlgmr.msra.gmra.mxu1 %v4286_v15  ;;  %2274 = vmatpush1.bf16.msra.mxu0 %v3610_v18  ;;  %v3646_v18 = vld [vmem:[#allocation5 + $0x630] ss:$24 sps:$4 sm:$0xff]   ;;  %v3678_v6 = vld [vmem:[#allocation5 + $0x844] ss:$24 sps:$4 sm:$0xff]  }
  0x9d   : > { %2367 = vmatpush1.bf16.msra.mxu1 %v3613_v19  ;;  %2275 = vmatprep.subr.bf16.mxu0 %v3618_v20  ;;  %v3649_v19 = vld [vmem:[#allocation5 + $0x38] ss:$24 sps:$4 sm:$0xff]   ;;  %v3654_v20 = vld [vmem:[#allocation5 + $0x604] ss:$24 sps:$4 sm:$0xff]  }
  0x9e   : > { %2368 = vmatprep.subr.bf16.mxu1 %v3621_v21  ;;  %2129 = vmatprep.mubr.bf16.mxu0 %v4290_v23  ;;  %v3657_v21 = vld [vmem:[#allocation5 + $0xc] ss:$24 sps:$4 sm:$0xff]  }
  0x9f   : > { %2222 = vmatprep.mubr.bf16.mxu1 %v4292_v24 }
  0xa0   : > { %2276 = vmatpush1.bf16.msra.mxu0 %v3616_v22  ;;  %v3652_v22 = vld [vmem:[#allocation5 + $0x600] ss:$24 sps:$4 sm:$0xff]  }
  0xa1   : > { %2369 = vmatpush1.bf16.msra.mxu1 %v3619_v25  ;;  %2277 = vmatprep.subr.bf16.mxu0 %v3624_v26  ;;  %v4350_v25 = vpack.c.bf16 %v274_v11, %v268_v10  ;;  %v4352_v26 = vpack.c.bf16 %v276_v17, %v270_v16  ;;  %v3679_v10 = vld [vmem:[#allocation5 + $0x248] ss:$24 sps:$4 sm:$0xff]   ;;  %v3684_v11 = vld [vmem:[#allocation5 + $0x814] ss:$24 sps:$4 sm:$0xff]  }
  0xa2   : > { %2370 = vmatprep.subr.bf16.mxu1 %v3627_v31  ;;  %v269_v31 = vld [vmem:[%s4258_s6 + $0x190] sm:$0xff] }
  0xa3   : > { %2130 = vmatmul.mubr.bf16.gmra.mxu0 %v4304_v34  ;;  %v3687_v16 = vld [vmem:[#allocation5 + $0x21c] ss:$24 sps:$4 sm:$0xff]   ;;  %v3682_v17 = vld [vmem:[#allocation5 + $0x810] ss:$24 sps:$4 sm:$0xff]  }
  0xa4   : > { %2223 = vmatmul.mubr.bf16.gmra.mxu1 %v4306_v35  ;;  %2278 = vmatpush1.bf16.msra.mxu0 %v3622_v38  ;;  %v280_v38 = vld [vmem:[%s4258_s6 + $0x1e8] sm:$0xff] }
  0xa5   : > { %2371 = vmatpush1.bf16.msra.mxu1 %v3625_v39  ;;  %2279 = vmatprep.subr.bf16.mxu0 %v3630_v40  ;;  %v286_v39 = vld [vmem:[%s4258_s6 + $0x218] sm:$0xff]  ;;  %v4364_v40 = vpack.c.bf16 %v273_v30, %v267_v29  ;;  %v3694_v29 = vld [vmem:[#allocation5 + $0x7b0] ss:$24 sps:$4 sm:$0xff]  }
  0xa6   : > { %2372 = vmatprep.subr.bf16.mxu1 %v3633_v41  ;;  %2139 = vmatprep.mubr.bf16.mxu0 %v4310_v43  ;;  %v4366_v41 = vpack.c.bf16 %v275_v32, %v269_v31  ;;  %v4370_v50 = vpack.c.bf16 %v286_v39, %v280_v38  ;;  %v3697_v30 = vld [vmem:[#allocation5 + $0x1b8] ss:$24 sps:$4 sm:$0xff]   ;;  %v3702_v31 = vld [vmem:[#allocation5 + $0x784] ss:$24 sps:$4 sm:$0xff]  }
  0xa7   : > { %2232 = vmatprep.mubr.bf16.mxu1 %v4312_v44  ;;  %v3705_v32 = vld [vmem:[#allocation5 + $0x18c] ss:$24 sps:$4 sm:$0xff]   ;;  %v229_v38 = vld [vmem:[%s4258_s6 + $0x50] sm:$0xff] }
  0xa8   : > { %2280 = vmatpush1.bf16.msra.mxu0 %v3628_v42  ;;  %v282_v42 = vld [vmem:[%s4258_s6 + $0x1f8] sm:$0xff] }
  0xa9   : > { %2373 = vmatpush1.bf16.msra.mxu1 %v3631_v45  ;;  %2281 = vmatprep.subr.bf16.mxu0 %v3636_v46  ;;  %v288_v45 = vld [vmem:[%s4258_s6 + $0x228] sm:$0xff]  ;;  %v3666_v46 = vld [vmem:[#allocation5 + $0x8a4] ss:$24 sps:$4 sm:$0xff]  }
  0xaa   : > { %2374 = vmatprep.subr.bf16.mxu1 %v3639_v51  ;;  %v279_v51 = vld [vmem:[%s4258_s6 + $0x1e0] sm:$0xff]  ;;  %v4373_v52 = vpack.c.bf16 %v288_v45, %v282_v42  ;;  %v3708_v39 = vld [vmem:[#allocation5 + $0x45c] ss:$24 sps:$4 sm:$0xff]  }
  0xab   : > { %2140 = vmatmul.mubr.bf16.gmra.mxu0 %v4324_v56  ;;  %v3711_v42 = vld [vmem:[#allocation5 + $0x75c] ss:$24 sps:$4 sm:$0xff]  }
  0xac   : > { %2233 = vmatmul.mubr.bf16.gmra.mxu1 %v4326_v57  ;;  %2282 = vmatpush1.bf16.msra.mxu0 %v3634_v60  ;;  %v3672_v60 = vld [vmem:[#allocation5 + $0x874] ss:$24 sps:$4 sm:$0xff]  }
  0xad   : > { %2375 = vmatpush1.bf16.msra.mxu1 %v3637_v61  ;;  %2283 = vmatprep.subr.bf16.mxu0 %v3642_v62  ;;  %v3675_v61 = vld [vmem:[#allocation5 + $0x27c] ss:$24 sps:$4 sm:$0xff]   ;;  %v3670_v62 = vld [vmem:[#allocation5 + $0x870] ss:$24 sps:$4 sm:$0xff]  }
  0xae   : > { %2376 = vmatprep.subr.bf16.mxu1 %v3645_v63  ;;  %2149 = vmatprep.mubr.bf16.mxu0 %v4330_v1  ;;  %v3673_v63 = vld [vmem:[#allocation5 + $0x278] ss:$24 sps:$4 sm:$0xff]  }
  0xaf   : > { %2242 = vmatprep.mubr.bf16.mxu1 %v4332_v2 }
  0xb0   : > { %2284 = vmatpush1.bf16.msra.mxu0 %v3640_v0  ;;  %v4382_v0 = vpack.c.bf16 %v285_v55, %v279_v51  ;;  %v3714_v51 = vld [vmem:[#allocation5 + $0x42c] ss:$24 sps:$4 sm:$0xff]  }
  0xb1   : > { %2377 = vmatpush1.bf16.msra.mxu1 %v3643_v3  ;;  %2285 = vmatprep.subr.bf16.mxu0 %v3648_v4  ;;  %v4384_v3 = vpack.c.bf16 %v287_v59, %v281_v58  ;;  %v224_v4 = vld [vmem:[%s4258_s6 + $0x28] sm:$0xff] }
  0xb2   : > { %2378 = vmatprep.subr.bf16.mxu1 %v3651_v9  ;;  %v4388_v8 = vpack.c.bf16 %v230_v5, %v224_v4  ;;  %v3676_v9 = vld [vmem:[#allocation5 + $0x840] ss:$24 sps:$4 sm:$0xff]   ;;  %v3717_v55 = vld [vmem:[#allocation5 + $0x72c] ss:$24 sps:$4 sm:$0xff]   ;;  %v3723_v4 = vld [vmem:[#allocation5 + $0x6fc] ss:$24 sps:$4 sm:$0xff]  }
  0xb3   : > { %2150 = vmatmul.mubr.bf16.gmra.mxu0 %v4344_v12  ;;  %v3712_v58 = vld [vmem:[#allocation5 + $0x428] ss:$24 sps:$4 sm:$0xff]   ;;  %v3718_v5 = vld [vmem:[#allocation5 + $0x3f8] ss:$24 sps:$4 sm:$0xff]  }
  0xb4   : > { %2243 = vmatmul.mubr.bf16.gmra.mxu1 %v4346_v13  ;;  %2286 = vmatpush1.bf16.msra.mxu0 %v3646_v18  ;;  %v3685_v18 = vld [vmem:[#allocation5 + $0x218] ss:$24 sps:$4 sm:$0xff]   ;;  %v3715_v59 = vld [vmem:[#allocation5 + $0x728] ss:$24 sps:$4 sm:$0xff]  }
  0xb5   : > { %2379 = vmatpush1.bf16.msra.mxu1 %v3649_v19  ;;  %2287 = vmatprep.subr.bf16.mxu0 %v3654_v20  ;;  %v3690_v19 = vld [vmem:[#allocation5 + $0x7e4] ss:$24 sps:$4 sm:$0xff]  }
  0xb6   : > { %2380 = vmatprep.subr.bf16.mxu1 %v3657_v21  ;;  %2159 = vmatprep.mubr.bf16.mxu0 %v4350_v25  ;;  %v3693_v20 = vld [vmem:[#allocation5 + $0x1ec] ss:$24 sps:$4 sm:$0xff]   ;;  %v3688_v21 = vld [vmem:[#allocation5 + $0x7e0] ss:$24 sps:$4 sm:$0xff]  }
  0xb7   : > { %2252 = vmatprep.mubr.bf16.mxu1 %v4352_v26 }
  0xb8   : > { %2288 = vmatpush1.bf16.msra.mxu0 %v3652_v22  ;;  %v3691_v22 = vld [vmem:[#allocation5 + $0x1e8] ss:$24 sps:$4 sm:$0xff]  }
  0xb9   : > { %2381 = vmatpush1.bf16.msra.mxu1 %v3655_v27  ;;  %2289 = vmatprep.subr.bf16.mxu0 %v3660_v28  ;;  %v3696_v27 = vld [vmem:[#allocation5 + $0x7b4] ss:$24 sps:$4 sm:$0xff]  }
  0xba   : > { %2382 = vmatprep.subr.bf16.mxu1 %v3663_v33  ;;  %v3699_v28 = vld [vmem:[#allocation5 + $0x1bc] ss:$24 sps:$4 sm:$0xff]   ;;  %v3700_v33 = vld [vmem:[#allocation5 + $0x780] ss:$24 sps:$4 sm:$0xff]  }
  0xbb   : > { %2160 = vmatmul.mubr.bf16.gmra.mxu0 %v4364_v40 }
  0xbc   : > { %2253 = vmatmul.mubr.bf16.gmra.mxu1 %v4366_v41  ;;  %2290 = vmatpush2.bf16.msra.mxu0 %v3658_v36  ;;  %v3703_v36 = vld [vmem:[#allocation5 + $0x188] ss:$24 sps:$4 sm:$0xff]  }
  0xbd   : > { %2383 = vmatpush2.bf16.msra.mxu1 %v3661_v37  ;;  %2291 = vmatprep.subr.bf16.mxu0 %v3666_v46  ;;  %v223_v37 = vld [vmem:[%s4258_s6 + $0x20] sm:$0xff]  ;;  %v236_v46 = vld [vmem:[%s4258_s6 + $0x88] sm:$0xff] }
  0xbe   : > { %2384 = vmatprep.subr.bf16.mxu1 %v3669_v47  ;;  %2169 = vmatprep.mubr.bf16.mxu0 %v4370_v50  ;;  %v4396_v45 = vpack.c.bf16 %v229_v38, %v223_v37  ;;  %v242_v47 = vld [vmem:[%s4258_s6 + $0xb8] sm:$0xff]  ;;  %v3736_v37 = vld [vmem:[#allocation5 + $0x368] ss:$24 sps:$4 sm:$0xff]  }
  0xbf   : > { %2262 = vmatprep.mubr.bf16.mxu1 %v4373_v52  ;;  %v3739_v38 = vld [vmem:[#allocation5 + $0x668] ss:$24 sps:$4 sm:$0xff]  }
  0xc0   : > { %2292 = vmatpush2.bf16.msra.mxu0 %v3664_v48  ;;  %v3706_v48 = vld [vmem:[#allocation5 + $0x458] ss:$24 sps:$4 sm:$0xff]  }
  0xc1   : > { %2385 = vmatpush2.bf16.msra.mxu1 %v3667_v49  ;;  %2293 = vmatprep.subr.bf16.mxu0 %v3672_v60  ;;  %v3709_v49 = vld [vmem:[#allocation5 + $0x758] ss:$24 sps:$4 sm:$0xff]   ;;  %v4400_v60 = vpack.c.bf16 %v242_v47, %v236_v46  ;;  %v3744_v47 = vld [vmem:[#allocation5 + $0x33c] ss:$24 sps:$4 sm:$0xff]  }
  0xc2   : > { %2386 = vmatprep.subr.bf16.mxu1 %v3675_v61  ;;  %v235_v61 = vld [vmem:[%s4258_s6 + $0x80] sm:$0xff]  ;;  %v265_v46 = vld [vmem:[%s4258_s6 + $0x170] sm:$0xff] }
  0xc3   : > { %2170 = vmatmul.mubr.bf16.gmra.mxu0 %v4382_v0 }
  0xc4   : > { %2263 = vmatmul.mubr.bf16.gmra.mxu1 %v4384_v3  ;;  %2294 = vmatpush2.bf16.msra.mxu0 %v3670_v62  ;;  %v241_v62 = vld [vmem:[%s4258_s6 + $0xb0] sm:$0xff] }
  0xc5   : > { %2387 = vmatpush2.bf16.msra.mxu1 %v3673_v63  ;;  %2295 = vmatprep.subr.bf16.mxu0 %v3678_v6  ;;  %v3720_v63 = vld [vmem:[#allocation5 + $0x3fc] ss:$24 sps:$4 sm:$0xff]   ;;  %v4408_v6 = vpack.c.bf16 %v241_v62, %v235_v61  ;;  %v3750_v61 = vld [vmem:[#allocation5 + $0x30c] ss:$24 sps:$4 sm:$0xff]  }
  0xc6   : > { %2388 = vmatprep.subr.bf16.mxu1 %v3681_v7  ;;  %2305 = vmatprep.mubr.bf16.mxu0 %v4388_v8  ;;  %v3721_v7 = vld [vmem:[#allocation5 + $0x6f8] ss:$24 sps:$4 sm:$0xff]   ;;  %v3753_v62 = vld [vmem:[#allocation5 + $0x60c] ss:$24 sps:$4 sm:$0xff]  }
  0xc7   : > { %2398 = vmatprep.mubr.bf16.mxu1 %v4272_v53 }
  0xc8   : > { %2296 = vmatpush2.bf16.msra.mxu0 %v3676_v9  ;;  %v248_v9 = vld [vmem:[%s4258_s6 + $0xe8] sm:$0xff] }
  0xc9   : > { %2389 = vmatpush2.bf16.msra.mxu1 %v3679_v10  ;;  %2297 = vmatprep.subr.bf16.mxu0 %v3684_v11  ;;  %v254_v10 = vld [vmem:[%s4258_s6 + $0x118] sm:$0xff]  ;;  %v3726_v11 = vld [vmem:[#allocation5 + $0x3cc] ss:$24 sps:$4 sm:$0xff]  }
  0xca   : > { %2390 = vmatprep.subr.bf16.mxu1 %v3687_v16  ;;  %v3729_v16 = vld [vmem:[#allocation5 + $0x6cc] ss:$24 sps:$4 sm:$0xff]  }
  0xcc   : > { %2298 = vmatpush2.bf16.msra.mxu0 %v3682_v17  ;;  %v3724_v17 = vld [vmem:[#allocation5 + $0x3c8] ss:$24 sps:$4 sm:$0xff]  }
  0xcd   : > { %2391 = vmatpush2.bf16.msra.mxu1 %v3685_v18  ;;  %2299 = vmatprep.subr.bf16.mxu0 %v3690_v19  ;;  %v3727_v18 = vld [vmem:[#allocation5 + $0x6c8] ss:$24 sps:$4 sm:$0xff]   ;;  %v4412_v19 = vpack.c.bf16 %v254_v10, %v248_v9  ;;  %v277_v9 = vld [vmem:[%s4258_s6 + $0x1d0] sm:$0xff] }
  0xce   : > { %2392 = vmatprep.subr.bf16.mxu1 %v3693_v20  ;;  %v247_v20 = vld [vmem:[%s4258_s6 + $0xe0] sm:$0xff]  ;;  %v3756_v10 = vld [vmem:[#allocation5 + $0x5dc] ss:$24 sps:$4 sm:$0xff]  }
  0xd0   : > { %2300 = vmatpush2.bf16.msra.mxu0 %v3688_v21  ;;  %v253_v21 = vld [vmem:[%s4258_s6 + $0x110] sm:$0xff] }
  0xd1   : > { %2393 = vmatpush2.bf16.msra.mxu1 %v3691_v22  ;;  %2301 = vmatprep.subr.bf16.mxu0 %v3696_v27  ;;  %v3732_v22 = vld [vmem:[#allocation5 + $0x39c] ss:$24 sps:$4 sm:$0xff]  }
  0xd2   : > { %2394 = vmatprep.subr.bf16.mxu1 %v3699_v28  ;;  %v3735_v27 = vld [vmem:[#allocation5 + $0x69c] ss:$24 sps:$4 sm:$0xff]   ;;  %v3730_v28 = vld [vmem:[#allocation5 + $0x398] ss:$24 sps:$4 sm:$0xff]  }
  0xd4   : > { %2302 = vmatpush2.bf16.msra.mxu0 %v3694_v29  ;;  %v3733_v29 = vld [vmem:[#allocation5 + $0x698] ss:$24 sps:$4 sm:$0xff]  }
  0xd5   : > { %2395 = vmatpush2.bf16.msra.mxu1 %v3697_v30  ;;  %2303 = vmatprep.subr.bf16.mxu0 %v3702_v31  ;;  %v4420_v30 = vpack.c.bf16 %v253_v21, %v247_v20  ;;  %v260_v31 = vld [vmem:[%s4258_s6 + $0x148] sm:$0xff]  ;;  %v290_v21 = vld [vmem:[%s4258_s6 + $0x238] sm:$0xff] }
  0xd6   : > { %2396 = vmatprep.subr.bf16.mxu1 %v3705_v32  ;;  %v266_v32 = vld [vmem:[%s4258_s6 + $0x178] sm:$0xff]  ;;  %v284_v20 = vld [vmem:[%s4258_s6 + $0x208] sm:$0xff] }
  0xd8   : > { %2304 = vmatpush2.bf16.msra.mxu0 %v3700_v33  ;;  %v3738_v33 = vld [vmem:[#allocation5 + $0x36c] ss:$24 sps:$4 sm:$0xff]  }
  0xd9   : > { %2397 = vmatpush2.bf16.msra.mxu1 %v3703_v36  ;;  %2459 = vmatprep.subr.bf16.mxu0 %v3708_v39  ;;  %v3741_v36 = vld [vmem:[#allocation5 + $0x66c] ss:$24 sps:$4 sm:$0xff]   ;;  %v4424_v39 = vpack.c.bf16 %v266_v32, %v260_v31  ;;  %v4448_v31 = vpack.c.bf16 %v290_v21, %v284_v20 }
  0xda   : > { %2552 = vmatprep.subr.bf16.mxu1 %v3711_v42  ;;  %v259_v42 = vld [vmem:[%s4258_s6 + $0x140] sm:$0xff] }
  0xdb   : > { %2306 = vmatmul.mubr.bf16.vlgmr.msra.gmra.mxu0 %v4396_v45  ;;  %v283_v32 = vld [vmem:[%s4258_s6 + $0x200] sm:$0xff] }
  0xdc   : > { %2399 = vmatmul.mubr.bf16.vlgmr.msra.gmra.mxu1 %v4284_v14  ;;  %2460 = vmatpush1.bf16.msra.mxu0 %v3706_v48  ;;  %v3747_v48 = vld [vmem:[#allocation5 + $0x63c] ss:$24 sps:$4 sm:$0xff]   ;;  %v3798_v20 = vld [vmem:[#allocation5 + $0x48c] ss:$24 sps:$4 sm:$0xff]  }
  0xdd   : > { %2553 = vmatpush1.bf16.msra.mxu1 %v3709_v49  ;;  %2461 = vmatprep.subr.bf16.mxu0 %v3714_v51  ;;  %v3742_v49 = vld [vmem:[#allocation5 + $0x338] ss:$24 sps:$4 sm:$0xff]   ;;  %v3801_v21 = vld [vmem:[#allocation5 + $0x78c] ss:$24 sps:$4 sm:$0xff]  }
  0xde   : > { %2554 = vmatprep.subr.bf16.mxu1 %v3717_v55  ;;  %2315 = vmatprep.mubr.bf16.mxu0 %v4400_v60  ;;  %v3745_v51 = vld [vmem:[#allocation5 + $0x638] ss:$24 sps:$4 sm:$0xff]   ;;  %v4432_v55 = vpack.c.bf16 %v265_v46, %v259_v42 }
  0xdf   : > { %2408 = vmatprep.mubr.bf16.mxu1 %v4290_v23  ;;  %v3766_v42 = vld [vmem:[#allocation5 + $0x578] ss:$24 sps:$4 sm:$0xff]  }
  0xe0   : > { %2462 = vmatpush1.bf16.msra.mxu0 %v3712_v58  ;;  %v272_v58 = vld [vmem:[%s4258_s6 + $0x1a8] sm:$0xff]  ;;  %v3769_v46 = vld [vmem:[#allocation5 + $0x878] ss:$24 sps:$4 sm:$0xff]  }
  0xe1   : > { %2555 = vmatpush1.bf16.msra.mxu1 %v3715_v59  ;;  %2463 = vmatprep.subr.bf16.mxu0 %v3720_v63  ;;  %v278_v59 = vld [vmem:[%s4258_s6 + $0x1d8] sm:$0xff]  ;;  %v3748_v63 = vld [vmem:[#allocation5 + $0x308] ss:$24 sps:$4 sm:$0xff]  }
  0xe2   : > { %2556 = vmatprep.subr.bf16.mxu1 %v3723_v4  ;;  %v3751_v4 = vld [vmem:[#allocation5 + $0x608] ss:$24 sps:$4 sm:$0xff]  }
  0xe3   : > { %2316 = vmatmul.mubr.bf16.gmra.mxu0 %v4408_v6 }
  0xe4   : > { %2409 = vmatmul.mubr.bf16.gmra.mxu1 %v4304_v34  ;;  %2464 = vmatpush1.bf16.msra.mxu0 %v3718_v5  ;;  %v4436_v5 = vpack.c.bf16 %v278_v59, %v272_v58  ;;  %v3780_v58 = vld [vmem:[#allocation5 + $0x51c] ss:$24 sps:$4 sm:$0xff]  }
  0xe5   : > { %2557 = vmatpush1.bf16.msra.mxu1 %v3721_v7  ;;  %2465 = vmatprep.subr.bf16.mxu0 %v3726_v11  ;;  %v271_v7 = vld [vmem:[%s4258_s6 + $0x1a0] sm:$0xff]  ;;  %v3759_v11 = vld [vmem:[#allocation5 + $0x8dc] ss:$24 sps:$4 sm:$0xff]  }
  0xe6   : > { %2558 = vmatprep.subr.bf16.mxu1 %v3729_v16  ;;  %2325 = vmatprep.mubr.bf16.mxu0 %v4412_v19  ;;  %v3754_v16 = vld [vmem:[#allocation5 + $0x5d8] ss:$24 sps:$4 sm:$0xff]   ;;  %v3783_v59 = vld [vmem:[#allocation5 + $0x81c] ss:$24 sps:$4 sm:$0xff]  }
  0xe7   : > { %2418 = vmatprep.mubr.bf16.mxu1 %v4310_v43 }
  0xe8   : > { %2466 = vmatpush1.bf16.msra.mxu0 %v3724_v17  ;;  %v3757_v17 = vld [vmem:[#allocation5 + $0x8d8] ss:$24 sps:$4 sm:$0xff]  }
  0xe9   : > { %2559 = vmatpush1.bf16.msra.mxu1 %v3727_v18  ;;  %2467 = vmatprep.subr.bf16.mxu0 %v3732_v22  ;;  %v4444_v18 = vpack.c.bf16 %v277_v9, %v271_v7  ;;  %v3762_v22 = vld [vmem:[#allocation5 + $0x5ac] ss:$24 sps:$4 sm:$0xff]   ;;  %v3784_v7 = vld [vmem:[#allocation5 + $0x4e8] ss:$24 sps:$4 sm:$0xff]  }
  0xea   : > { %2560 = vmatprep.subr.bf16.mxu1 %v3735_v27  ;;  %v3765_v27 = vld [vmem:[#allocation5 + $0x8ac] ss:$24 sps:$4 sm:$0xff]   ;;  %v3787_v9 = vld [vmem:[#allocation5 + $0x7e8] ss:$24 sps:$4 sm:$0xff]  }
  0xeb   : > { %2326 = vmatmul.mubr.bf16.gmra.mxu0 %v4420_v30 }
  0xec   : > { %2419 = vmatmul.mubr.bf16.gmra.mxu1 %v4324_v56  ;;  %2468 = vmatpush1.bf16.msra.mxu0 %v3730_v28  ;;  %v3760_v28 = vld [vmem:[#allocation5 + $0x5a8] ss:$24 sps:$4 sm:$0xff]  }
  0xed   : > { %2561 = vmatpush1.bf16.msra.mxu1 %v3733_v29  ;;  %2469 = vmatprep.subr.bf16.mxu0 %v3738_v33  ;;  %v3763_v29 = vld [vmem:[#allocation5 + $0x8a8] ss:$24 sps:$4 sm:$0xff]   ;;  %v289_v33 = vld [vmem:[%s4258_s6 + $0x230] sm:$0xff] }
  0xee   : > { %2562 = vmatprep.subr.bf16.mxu1 %v3741_v36  ;;  %2335 = vmatprep.mubr.bf16.mxu0 %v4424_v39  ;;  %v3768_v36 = vld [vmem:[#allocation5 + $0x57c] ss:$24 sps:$4 sm:$0xff]  }
  0xef   : > { %2428 = vmatprep.mubr.bf16.mxu1 %v4330_v1 }
  0xf0   : > { %2470 = vmatpush1.bf16.msra.mxu0 %v3736_v37  ;;  %v3771_v37 = vld [vmem:[#allocation5 + $0x87c] ss:$24 sps:$4 sm:$0xff]  }
  0xf1   : > { %2563 = vmatpush1.bf16.msra.mxu1 %v3739_v38  ;;  %2471 = vmatprep.subr.bf16.mxu0 %v3744_v47  ;;  %v4456_v38 = vpack.c.bf16 %v289_v33, %v283_v32  ;;  %v3774_v47 = vld [vmem:[#allocation5 + $0x54c] ss:$24 sps:$4 sm:$0xff]   ;;  %v3802_v32 = vld [vmem:[#allocation5 + $0x160] ss:$24 sps:$4 sm:$0xff]  }
  0xf2   : > { %2564 = vmatprep.subr.bf16.mxu1 %v3747_v48  ;;  %v3777_v48 = vld [vmem:[#allocation5 + $0x84c] ss:$24 sps:$4 sm:$0xff]   ;;  %v3805_v33 = vld [vmem:[#allocation5 + $0x460] ss:$24 sps:$4 sm:$0xff]  }
  0xf3   : > { %2336 = vmatmul.mubr.bf16.gmra.mxu0 %v4432_v55 }
  0xf4   : > { %2429 = vmatmul.mubr.bf16.gmra.mxu1 %v4344_v12  ;;  %2472 = vmatpush1.bf16.msra.mxu0 %v3742_v49  ;;  %v3772_v49 = vld [vmem:[#allocation5 + $0x548] ss:$24 sps:$4 sm:$0xff]  }
  0xf5   : > { %2565 = vmatpush1.bf16.msra.mxu1 %v3745_v51  ;;  %2473 = vmatprep.subr.bf16.mxu0 %v3750_v61  ;;  %v3775_v51 = vld [vmem:[#allocation5 + $0x848] ss:$24 sps:$4 sm:$0xff]   ;;  %v3778_v61 = vld [vmem:[#allocation5 + $0x518] ss:$24 sps:$4 sm:$0xff]  }
  0xf6   : > { %2566 = vmatprep.subr.bf16.mxu1 %v3753_v62  ;;  %2345 = vmatprep.mubr.bf16.mxu0 %v4436_v5  ;;  %v3781_v62 = vld [vmem:[#allocation5 + $0x818] ss:$24 sps:$4 sm:$0xff]  }
  0xf7   : > { %2438 = vmatprep.mubr.bf16.mxu1 %v4350_v25 }
  0xf8   : > { %2474 = vmatpush1.bf16.msra.mxu0 %v3748_v63  ;;  %v3786_v63 = vld [vmem:[#allocation5 + $0x4ec] ss:$24 sps:$4 sm:$0xff]  }
  0xf9   : > { %2567 = vmatpush1.bf16.msra.mxu1 %v3751_v4  ;;  %2475 = vmatprep.subr.bf16.mxu0 %v3756_v10  ;;  %v3789_v4 = vld [vmem:[#allocation5 + $0x7ec] ss:$24 sps:$4 sm:$0xff]   ;;  %v3792_v10 = vld [vmem:[#allocation5 + $0x4bc] ss:$24 sps:$4 sm:$0xff]  }
  0xfa   : > { %2568 = vmatprep.subr.bf16.mxu1 %v3759_v11  ;;  %v3795_v11 = vld [vmem:[#allocation5 + $0x7bc] ss:$24 sps:$4 sm:$0xff]  }
  0xfb   : > { %2346 = vmatmul.mubr.bf16.gmra.mxu0 %v4444_v18 }
  0xfc   : > { %2439 = vmatmul.mubr.bf16.gmra.mxu1 %v4364_v40  ;;  %2476 = vmatpush2.bf16.msra.mxu0 %v3754_v16  ;;  %v3790_v16 = vld [vmem:[#allocation5 + $0x4b8] ss:$24 sps:$4 sm:$0xff]  }
  0xfd   : > { %2569 = vmatpush2.bf16.msra.mxu1 %v3757_v17  ;;  %2477 = vmatprep.subr.bf16.mxu0 %v3762_v22  ;;  %v3793_v17 = vld [vmem:[#allocation5 + $0x7b8] ss:$24 sps:$4 sm:$0xff]   ;;  %v3796_v22 = vld [vmem:[#allocation5 + $0x488] ss:$24 sps:$4 sm:$0xff]  }
  0xfe   : > { %2570 = vmatprep.subr.bf16.mxu1 %v3765_v27  ;;  %2355 = vmatprep.mubr.bf16.mxu0 %v4448_v31  ;;  %v3799_v27 = vld [vmem:[#allocation5 + $0x788] ss:$24 sps:$4 sm:$0xff]  }
  0xff   : > { %2448 = vmatprep.mubr.bf16.mxu1 %v4370_v50 }
 0x100   : > { %2478 = vmatpush2.bf16.msra.mxu0 %v3760_v28  ;;  %v3804_v28 = vld [vmem:[#allocation5 + $0x164] ss:$24 sps:$4 sm:$0xff]  }
 0x101   : > { %2571 = vmatpush2.bf16.msra.mxu1 %v3763_v29  ;;  %2479 = vmatprep.subr.bf16.mxu0 %v3768_v36  ;;  %v3807_v29 = vld [vmem:[#allocation5 + $0x464] ss:$24 sps:$4 sm:$0xff]   ;;  %v3810_v36 = vld [vmem:[#allocation5 + $0x134] ss:$24 sps:$4 sm:$0xff]  }
 0x102   : > { %2572 = vmatprep.subr.bf16.mxu1 %v3771_v37  ;;  %v3813_v37 = vld [vmem:[#allocation5 + $0x434] ss:$24 sps:$4 sm:$0xff]  }
 0x103   : > { %2356 = vmatmul.mubr.bf16.gmra.mxu0 %v4456_v38 }
 0x104   : > { %2449 = vmatmul.mubr.bf16.gmra.mxu1 %v4382_v0  ;;  %2480 = vmatpush2.bf16.msra.mxu0 %v3766_v42  ;;  %v3808_v42 = vld [vmem:[#allocation5 + $0x130] ss:$24 sps:$4 sm:$0xff]  }
 0x105   : > { %2573 = vmatpush2.bf16.msra.mxu1 %v3769_v46  ;;  %2481 = vmatprep.subr.bf16.mxu0 %v3774_v47  ;;  %v3811_v46 = vld [vmem:[#allocation5 + $0x430] ss:$24 sps:$4 sm:$0xff]   ;;  %v3816_v47 = vld [vmem:[#allocation5 + $0x104] ss:$24 sps:$4 sm:$0xff]  }
 0x106   : > { %2574 = vmatprep.subr.bf16.mxu1 %v3777_v48  ;;  %2491 = vmatprep.mubr.bf16.mxu0 %v4274_v54  ;;  %v3819_v48 = vld [vmem:[#allocation5 + $0x404] ss:$24 sps:$4 sm:$0xff]  }
 0x107   : > { %2584 = vmatprep.mubr.bf16.mxu1 %v4388_v8 }
 0x108   : > { %2482 = vmatpush2.bf16.msra.mxu0 %v3772_v49  ;;  %v3814_v49 = vld [vmem:[#allocation5 + $0x100] ss:$24 sps:$4 sm:$0xff]  }
 0x109   : > { %2575 = vmatpush2.bf16.msra.mxu1 %v3775_v51  ;;  %2483 = vmatprep.subr.bf16.mxu0 %v3780_v58  ;;  %v3817_v51 = vld [vmem:[#allocation5 + $0x400] ss:$24 sps:$4 sm:$0xff]   ;;  %v3822_v58 = vld [vmem:[#allocation5 + $0xd4] ss:$24 sps:$4 sm:$0xff]  }
 0x10a   : > { %2576 = vmatprep.subr.bf16.mxu1 %v3783_v59  ;;  %v3825_v59 = vld [vmem:[#allocation5 + $0x3d4] ss:$24 sps:$4 sm:$0xff]  }
 0x10c   : > { %2484 = vmatpush2.bf16.msra.mxu0 %v3778_v61  ;;  %v3820_v61 = vld [vmem:[#allocation5 + $0xd0] ss:$24 sps:$4 sm:$0xff]  }
 0x10d   : > { %2577 = vmatpush2.bf16.msra.mxu1 %v3781_v62  ;;  %2485 = vmatprep.subr.bf16.mxu0 %v3786_v63  ;;  %v3823_v62 = vld [vmem:[#allocation5 + $0x3d0] ss:$24 sps:$4 sm:$0xff]   ;;  %v3828_v63 = vld [vmem:[#allocation5 + $0xa4] ss:$24 sps:$4 sm:$0xff]  }
 0x10e   : > { %2578 = vmatprep.subr.bf16.mxu1 %v3789_v4  ;;  %v3831_v4 = vld [vmem:[#allocation5 + $0x3a4] ss:$24 sps:$4 sm:$0xff]  }
 0x110   : > { %2486 = vmatpush2.bf16.msra.mxu0 %v3784_v7  ;;  %v3826_v7 = vld [vmem:[#allocation5 + $0xa0] ss:$24 sps:$4 sm:$0xff]  }
 0x111   : > { %2579 = vmatpush2.bf16.msra.mxu1 %v3787_v9  ;;  %2487 = vmatprep.subr.bf16.mxu0 %v3792_v10  ;;  %v3829_v9 = vld [vmem:[#allocation5 + $0x3a0] ss:$24 sps:$4 sm:$0xff]   ;;  %v3834_v10 = vld [vmem:[#allocation5 + $0x74] ss:$24 sps:$4 sm:$0xff]  }
 0x112   : > { %2580 = vmatprep.subr.bf16.mxu1 %v3795_v11  ;;  %v3837_v11 = vld [vmem:[#allocation5 + $0x374] ss:$24 sps:$4 sm:$0xff]  }
 0x114   : > { %2488 = vmatpush2.bf16.msra.mxu0 %v3790_v16  ;;  %v3832_v16 = vld [vmem:[#allocation5 + $0x70] ss:$24 sps:$4 sm:$0xff]  }
 0x115   : > { %2581 = vmatpush2.bf16.msra.mxu1 %v3793_v17  ;;  %2489 = vmatprep.subr.bf16.mxu0 %v3798_v20  ;;  %v3835_v17 = vld [vmem:[#allocation5 + $0x370] ss:$24 sps:$4 sm:$0xff]   ;;  %v3840_v20 = vld [vmem:[#allocation5 + $0x44] ss:$24 sps:$4 sm:$0xff]  }
 0x116   : > { %2582 = vmatprep.subr.bf16.mxu1 %v3801_v21  ;;  %v3843_v21 = vld [vmem:[#allocation5 + $0x344] ss:$24 sps:$4 sm:$0xff]  }
 0x118   : > { %2490 = vmatpush2.bf16.msra.mxu0 %v3796_v22  ;;  %v3838_v22 = vld [vmem:[#allocation5 + $0x40] ss:$24 sps:$4 sm:$0xff]  }
 0x119   : > { %2583 = vmatpush2.bf16.msra.mxu1 %v3799_v27  ;;  %2645 = vmatprep.subr.bf16.mxu0 %v3804_v28  ;;  %v3841_v27 = vld [vmem:[#allocation5 + $0x340] ss:$24 sps:$4 sm:$0xff]   ;;  %v3846_v28 = vld [vmem:[#allocation5 + $0x14] ss:$24 sps:$4 sm:$0xff]  }
 0x11a   : > { %2738 = vmatprep.subr.bf16.mxu1 %v3807_v29  ;;  %v3849_v29 = vld [vmem:[#allocation5 + $0x314] ss:$24 sps:$4 sm:$0xff]  }
 0x11b   : > { %2492 = vmatmul.mubr.bf16.vlgmr.msra.gmra.mxu0 %v4286_v15 }
 0x11c   : > { %2585 = vmatmul.mubr.bf16.vlgmr.msra.gmra.mxu1 %v4396_v45  ;;  %2646 = vmatpush1.bf16.msra.mxu0 %v3802_v32  ;;  %v3844_v32 = vld [vmem:[#allocation5 + $0x10] ss:$24 sps:$4 sm:$0xff]  }
 0x11d   : > { %2739 = vmatpush1.bf16.msra.mxu1 %v3805_v33  ;;  %2647 = vmatprep.subr.bf16.mxu0 %v3810_v36  ;;  %v3847_v33 = vld [vmem:[#allocation5 + $0x310] ss:$24 sps:$4 sm:$0xff]   ;;  %v3852_v36 = vld [vmem:[#allocation5 + $0x2e4] ss:$24 sps:$4 sm:$0xff]  }
 0x11e   : > { %2740 = vmatprep.subr.bf16.mxu1 %v3813_v37  ;;  %2501 = vmatprep.mubr.bf16.mxu0 %v4292_v24  ;;  %v3855_v37 = vld [vmem:[#allocation5 + $0x5e4] ss:$24 sps:$4 sm:$0xff]  }
 0x11f   : > { %2594 = vmatprep.mubr.bf16.mxu1 %v4400_v60 }
 0x120   : > { %2648 = vmatpush1.bf16.msra.mxu0 %v3808_v42  ;;  %v3850_v42 = vld [vmem:[#allocation5 + $0x2e0] ss:$24 sps:$4 sm:$0xff]  }
 0x121   : > { %2741 = vmatpush1.bf16.msra.mxu1 %v3811_v46  ;;  %2649 = vmatprep.subr.bf16.mxu0 %v3816_v47  ;;  %v3853_v46 = vld [vmem:[#allocation5 + $0x5e0] ss:$24 sps:$4 sm:$0xff]   ;;  %v3858_v47 = vld [vmem:[#allocation5 + $0x2b4] ss:$24 sps:$4 sm:$0xff]  }
 0x122   : > { %2742 = vmatprep.subr.bf16.mxu1 %v3819_v48  ;;  %v3861_v48 = vld [vmem:[#allocation5 + $0x5b4] ss:$24 sps:$4 sm:$0xff]  }
 0x123   : > { %2502 = vmatmul.mubr.bf16.gmra.mxu0 %v4306_v35 }
 0x124   : > { %2595 = vmatmul.mubr.bf16.gmra.mxu1 %v4408_v6  ;;  %2650 = vmatpush1.bf16.msra.mxu0 %v3814_v49  ;;  %v3856_v49 = vld [vmem:[#allocation5 + $0x2b0] ss:$24 sps:$4 sm:$0xff]  }
 0x125   : > { %2743 = vmatpush1.bf16.msra.mxu1 %v3817_v51  ;;  %2651 = vmatprep.subr.bf16.mxu0 %v3822_v58  ;;  %v3859_v51 = vld [vmem:[#allocation5 + $0x5b0] ss:$24 sps:$4 sm:$0xff]   ;;  %v3864_v58 = vld [vmem:[#allocation5 + $0x284] ss:$24 sps:$4 sm:$0xff]  }
 0x126   : > { %2744 = vmatprep.subr.bf16.mxu1 %v3825_v59  ;;  %2511 = vmatprep.mubr.bf16.mxu0 %v4312_v44  ;;  %v3867_v59 = vld [vmem:[#allocation5 + $0x584] ss:$24 sps:$4 sm:$0xff]  }
 0x127   : > { %2604 = vmatprep.mubr.bf16.mxu1 %v4412_v19 }
 0x128   : > { %2652 = vmatpush1.bf16.msra.mxu0 %v3820_v61  ;;  %v3862_v61 = vld [vmem:[#allocation5 + $0x280] ss:$24 sps:$4 sm:$0xff]  }
 0x129   : > { %2745 = vmatpush1.bf16.msra.mxu1 %v3823_v62  ;;  %2653 = vmatprep.subr.bf16.mxu0 %v3828_v63  ;;  %v3865_v62 = vld [vmem:[#allocation5 + $0x580] ss:$24 sps:$4 sm:$0xff]   ;;  %v3870_v63 = vld [vmem:[#allocation5 + $0x254] ss:$24 sps:$4 sm:$0xff]  }
 0x12a   : > { %2746 = vmatprep.subr.bf16.mxu1 %v3831_v4  ;;  %v3873_v4 = vld [vmem:[#allocation5 + $0x554] ss:$24 sps:$4 sm:$0xff]  }
 0x12b   : > { %2512 = vmatmul.mubr.bf16.gmra.mxu0 %v4326_v57 }
 0x12c   : > { %2605 = vmatmul.mubr.bf16.gmra.mxu1 %v4420_v30  ;;  %2654 = vmatpush1.bf16.msra.mxu0 %v3826_v7  ;;  %v3868_v7 = vld [vmem:[#allocation5 + $0x250] ss:$24 sps:$4 sm:$0xff]  }
 0x12d   : > { %2747 = vmatpush1.bf16.msra.mxu1 %v3829_v9  ;;  %2655 = vmatprep.subr.bf16.mxu0 %v3834_v10  ;;  %v3871_v9 = vld [vmem:[#allocation5 + $0x550] ss:$24 sps:$4 sm:$0xff]   ;;  %v3876_v10 = vld [vmem:[#allocation5 + $0x224] ss:$24 sps:$4 sm:$0xff]  }
 0x12e   : > { %2748 = vmatprep.subr.bf16.mxu1 %v3837_v11  ;;  %2521 = vmatprep.mubr.bf16.mxu0 %v4332_v2  ;;  %v3879_v11 = vld [vmem:[#allocation5 + $0x524] ss:$24 sps:$4 sm:$0xff]  }
 0x12f   : > { %2614 = vmatprep.mubr.bf16.mxu1 %v4424_v39 }
 0x130   : > { %2656 = vmatpush1.bf16.msra.mxu0 %v3832_v16  ;;  %v3874_v16 = vld [vmem:[#allocation5 + $0x220] ss:$24 sps:$4 sm:$0xff]  }
 0x131   : > { %2749 = vmatpush1.bf16.msra.mxu1 %v3835_v17  ;;  %2657 = vmatprep.subr.bf16.mxu0 %v3840_v20  ;;  %v3877_v17 = vld [vmem:[#allocation5 + $0x520] ss:$24 sps:$4 sm:$0xff]   ;;  %v3882_v20 = vld [vmem:[#allocation5 + $0x1f4] ss:$24 sps:$4 sm:$0xff]  }
 0x132   : > { %2750 = vmatprep.subr.bf16.mxu1 %v3843_v21  ;;  %v3885_v21 = vld [vmem:[#allocation5 + $0x4f4] ss:$24 sps:$4 sm:$0xff]  }
 0x133   : > { %2522 = vmatmul.mubr.bf16.gmra.mxu0 %v4346_v13 }
 0x134   : > { %2615 = vmatmul.mubr.bf16.gmra.mxu1 %v4432_v55  ;;  %2658 = vmatpush1.bf16.msra.mxu0 %v3838_v22  ;;  %v3880_v22 = vld [vmem:[#allocation5 + $0x1f0] ss:$24 sps:$4 sm:$0xff]  }
 0x135   : > { %2751 = vmatpush1.bf16.msra.mxu1 %v3841_v27  ;;  %2659 = vmatprep.subr.bf16.mxu0 %v3846_v28  ;;  %v3883_v27 = vld [vmem:[#allocation5 + $0x4f0] ss:$24 sps:$4 sm:$0xff]   ;;  %v3888_v28 = vld [vmem:[#allocation5 + $0x1c4] ss:$24 sps:$4 sm:$0xff]  }
 0x136   : > { %2752 = vmatprep.subr.bf16.mxu1 %v3849_v29  ;;  %2531 = vmatprep.mubr.bf16.mxu0 %v4352_v26  ;;  %v3891_v29 = vld [vmem:[#allocation5 + $0x4c4] ss:$24 sps:$4 sm:$0xff]  }
 0x137   : > { %2624 = vmatprep.mubr.bf16.mxu1 %v4436_v5 }
 0x138   : > { %2660 = vmatpush1.bf16.msra.mxu0 %v3844_v32  ;;  %v3894_v32 = vld [vmem:[#allocation5 + $0x194] ss:$24 sps:$4 sm:$0xff]  }
 0x139   : > { %2753 = vmatpush1.bf16.msra.mxu1 %v3847_v33  ;;  %2661 = vmatprep.subr.bf16.mxu0 %v3852_v36  ;;  %v3897_v33 = vld [vmem:[#allocation5 + $0x494] ss:$24 sps:$4 sm:$0xff]   ;;  %v3892_v36 = vld [vmem:[#allocation5 + $0x190] ss:$24 sps:$4 sm:$0xff]  }
 0x13a   : > { %2754 = vmatprep.subr.bf16.mxu1 %v3855_v37  ;;  %v3895_v37 = vld [vmem:[#allocation5 + $0x490] ss:$24 sps:$4 sm:$0xff]  }
 0x13b   : > { %2532 = vmatmul.mubr.bf16.gmra.mxu0 %v4366_v41 }
 0x13c   : > { %2625 = vmatmul.mubr.bf16.gmra.mxu1 %v4444_v18  ;;  %2662 = vmatpush2.bf16.msra.mxu0 %v3850_v42  ;;  %v3900_v42 = vld [vmem:[#allocation5 + $0x764] ss:$24 sps:$4 sm:$0xff]  }
 0x13d   : > { %2755 = vmatpush2.bf16.msra.mxu1 %v3853_v46  ;;  %2663 = vmatprep.subr.bf16.mxu0 %v3858_v47  ;;  %v3898_v46 = vld [vmem:[#allocation5 + $0x760] ss:$24 sps:$4 sm:$0xff]   ;;  %v3903_v47 = vld [vmem:[#allocation5 + $0x734] ss:$24 sps:$4 sm:$0xff]  }
 0x13e   : > { %2756 = vmatprep.subr.bf16.mxu1 %v3861_v48  ;;  %2541 = vmatprep.mubr.bf16.mxu0 %v4373_v52 }
 0x13f   : > { %2634 = vmatprep.mubr.bf16.mxu1 %v4448_v31 }
 0x140   : > { %2664 = vmatpush2.bf16.msra.mxu0 %v3856_v49 }
 0x141   : > { %2757 = vmatpush2.bf16.msra.mxu1 %v3859_v51  ;;  %2665 = vmatprep.subr.bf16.mxu0 %v3864_v58  ;;  %v3901_v51 = vld [vmem:[#allocation5 + $0x730] ss:$24 sps:$4 sm:$0xff]  }
 0x142   : > { %2758 = vmatprep.subr.bf16.mxu1 %v3867_v59 }
 0x143   : > { %2542 = vmatmul.mubr.bf16.gmra.mxu0 %v4384_v3 }
 0x144   : > { %2635 = vmatmul.mubr.bf16.gmra.mxu1 %v4456_v38  ;;  %2666 = vmatpush2.bf16.msra.mxu0 %v3862_v61  ;;  %v3906_v61 = vld [vmem:[#allocation5 + $0x704] ss:$24 sps:$4 sm:$0xff]  }
 0x145   : > { %2759 = vmatpush2.bf16.msra.mxu1 %v3865_v62  ;;  %2667 = vmatprep.subr.bf16.mxu0 %v3870_v63 }
 0x146   : > { %2760 = vmatprep.subr.bf16.mxu1 %v3873_v4  ;;  %2677 = vmatprep.mubr.bf16.mxu0 %v4272_v53  ;;  %v3886_v53 = vld [vmem:[#allocation5 + $0x1c0] ss:$24 sps:$4 sm:$0xff]  }
 0x147   : > { %2770 = vmatprep.mubr.bf16.mxu1 %v4274_v54  ;;  %v3889_v54 = vld [vmem:[#allocation5 + $0x4c0] ss:$24 sps:$4 sm:$0xff]  }
 0x148   : > { %2668 = vmatpush2.bf16.msra.mxu0 %v3868_v7  ;;  %v3909_v7 = vld [vmem:[#allocation5 + $0x6d4] ss:$24 sps:$4 sm:$0xff]  }
 0x149   : > { %2761 = vmatpush2.bf16.msra.mxu1 %v3871_v9  ;;  %2669 = vmatprep.subr.bf16.mxu0 %v3876_v10  ;;  %v3912_v10 = vld [vmem:[#allocation5 + $0x6a4] ss:$24 sps:$4 sm:$0xff]  }
 0x14a   : > { %2762 = vmatprep.subr.bf16.mxu1 %v3879_v11 }
 0x14c   : > { %2670 = vmatpush2.bf16.msra.mxu0 %v3874_v16 }
 0x14d   : > { %2763 = vmatpush2.bf16.msra.mxu1 %v3877_v17  ;;  %2671 = vmatprep.subr.bf16.mxu0 %v3882_v20  ;;  %v3915_v20 = vld [vmem:[#allocation5 + $0x674] ss:$24 sps:$4 sm:$0xff]  }
 0x14e   : > { %2764 = vmatprep.subr.bf16.mxu1 %v3885_v21 }
 0x150   : > { %2672 = vmatpush2.bf16.msra.mxu0 %v3880_v22 }
 0x151   : > { %2765 = vmatpush2.bf16.msra.mxu1 %v3883_v27  ;;  %2673 = vmatprep.subr.bf16.mxu0 %v3888_v28  ;;  %v3918_v28 = vld [vmem:[#allocation5 + $0x644] ss:$24 sps:$4 sm:$0xff]  }
 0x152   : > { %2766 = vmatprep.subr.bf16.mxu1 %v3891_v29 }
 0x154   : > { %2674 = vmatpush2.bf16.msra.mxu0 %v3886_v53 }
 0x155   : > { %2767 = vmatpush2.bf16.msra.mxu1 %v3889_v54  ;;  %2675 = vmatprep.subr.bf16.mxu0 %v3894_v32  ;;  %v3921_v32 = vld [vmem:[#allocation5 + $0x614] ss:$24 sps:$4 sm:$0xff]  }
 0x156   : > { %2768 = vmatprep.subr.bf16.mxu1 %v3897_v33 }
 0x158   : > { %2676 = vmatpush2.bf16.msra.mxu0 %v3892_v36 }
 0x159   : > { %2769 = vmatpush2.bf16.msra.mxu1 %v3895_v37  ;;  %2831 = vmatprep.subr.bf16.mxu0 %v3900_v42 }
 0x15a   : > { %3403 = vmatprep.subr.bf16.mxu1 %v3900_v42  ;;  %v3924_v42 = vld [vmem:[#allocation5 + $0x8e4] ss:$24 sps:$4 sm:$0xff]  }
 0x15b   : > { %v4486_v48 = vpop.f32.mrf.mxu0  ;;  %2678 = vmatmul.mubr.bf16.vlgmr.msra.gmra.mxu0 %v4284_v14  ;;  %v3904_v14 = vld [vmem:[#allocation5 + $0x700] ss:$24 sps:$4 sm:$0xff]  }
 0x15c   : > { %v4488_v49 = vpop.f32.mrf.mxu1  ;;  %2771 = vmatmul.mubr.bf16.vlgmr.msra.gmra.mxu1 %v4286_v15  ;;  %2832 = vmatpush1.bf16.msra.mxu0 %v3898_v46 }
 0x15d   : > { %3419 = vmatpush1.bf16.msra.mxu1 %v3898_v46  ;;  %v4492_v58 = vpop.f32.mrf.mxu0  ;;  %2833 = vmatprep.subr.bf16.mxu0 %v3903_v47 }
 0x15e   : > { %v4494_v59 = vpop.f32.mrf.mxu1  ;;  %3404 = vmatprep.subr.bf16.mxu1 %v3903_v47  ;;  %2687 = vmatprep.mubr.bf16.mxu0 %v4290_v23 }
 0x15f   : > { %2780 = vmatprep.mubr.bf16.mxu1 %v4292_v24  ;;  %v4498_v62 = vpop.f32.mrf.mxu0  ;;  %v3907_v24 = vld [vmem:[#allocation5 + $0x6d0] ss:$24 sps:$4 sm:$0xff]  }
 0x160   : > { %v4500_v63 = vpop.f32.mrf.mxu1  ;;  %2834 = vmatpush1.bf16.msra.mxu0 %v3901_v51 }
 0x161   : > { %3420 = vmatpush1.bf16.msra.mxu1 %v3901_v51  ;;  %v4502_v15 = vpop.f32.mrf.mxu0  ;;  %2835 = vmatprep.subr.bf16.mxu0 %v3906_v61 }
 0x162   : > { %v4504_v4 = vpop.f32.mrf.mxu1  ;;  %3405 = vmatprep.subr.bf16.mxu1 %v3906_v61  ;;  %v3927_v61 = vld [vmem:[#allocation5 + $0x8b4] ss:$24 sps:$4 sm:$0xff]  }
 0x163   : > { %2688 = vmatmul.mubr.bf16.gmra.mxu0 %v4304_v34  ;;  %v4507_v9 = vpop.f32.mrf.mxu0 }
 0x164   : > { %2781 = vmatmul.mubr.bf16.gmra.mxu1 %v4306_v35  ;;  %v4510_v23 = vpop.f32.mrf.mxu1  ;;  %2836 = vmatpush1.bf16.msra.mxu0 %v3904_v14  ;;  %v3910_v35 = vld [vmem:[#allocation5 + $0x6a0] ss:$24 sps:$4 sm:$0xff]  }
 0x165   : > { %3421 = vmatpush1.bf16.msra.mxu1 %v3904_v14  ;;  %2837 = vmatprep.subr.bf16.mxu0 %v3909_v7  ;;  %v4512_v11 = vpop.f32.mrf.mxu0 }
 0x166   : > { %3406 = vmatprep.subr.bf16.mxu1 %v3909_v7  ;;  %v4514_v16 = vpop.f32.mrf.mxu1  ;;  %2697 = vmatprep.mubr.bf16.mxu0 %v4310_v43 }
 0x167   : > { %2790 = vmatprep.mubr.bf16.mxu1 %v4312_v44  ;;  %v4518_v34 = vpop.f32.mrf.mxu0  ;;  %v3913_v44 = vld [vmem:[#allocation5 + $0x670] ss:$24 sps:$4 sm:$0xff]  }
 0x168   : > { %v4520_v17 = vpop.f32.mrf.mxu1  ;;  %2838 = vmatpush1.bf16.msra.mxu0 %v3907_v24 }
 0x169   : > { %3422 = vmatpush1.bf16.msra.mxu1 %v3907_v24  ;;  %2839 = vmatprep.subr.bf16.mxu0 %v3912_v10  ;;  %v4522_v21 = vpop.f32.mrf.mxu0 }
 0x16a   : > { %3407 = vmatprep.subr.bf16.mxu1 %v3912_v10  ;;  %v4524_v22 = vpop.f32.mrf.mxu1 }
 0x16b   : > { %2698 = vmatmul.mubr.bf16.gmra.mxu0 %v4324_v56  ;;  %v4527_v27 = vpop.f32.mrf.mxu0 }
 0x16c   : > { %2791 = vmatmul.mubr.bf16.gmra.mxu1 %v4326_v57  ;;  %v4530_v43 = vpop.f32.mrf.mxu1  ;;  %2840 = vmatpush1.bf16.msra.mxu0 %v3910_v35  ;;  %v3916_v57 = vld [vmem:[#allocation5 + $0x640] ss:$24 sps:$4 sm:$0xff]  }
 0x16d   : > { %3423 = vmatpush1.bf16.msra.mxu1 %v3910_v35  ;;  %2841 = vmatprep.subr.bf16.mxu0 %v3915_v20  ;;  %v4532_v29 = vpop.f32.mrf.mxu0  ;;  %v3928_v35 = vld [vmem:[#allocation5 + $0x880] ss:$24 sps:$4 sm:$0xff]  }
 0x16e   : > { %3408 = vmatprep.subr.bf16.mxu1 %v3915_v20  ;;  %v4534_v53 = vpop.f32.mrf.mxu1  ;;  %2707 = vmatprep.mubr.bf16.mxu0 %v4330_v1 }
 0x16f   : > { %2800 = vmatprep.mubr.bf16.mxu1 %v4332_v2  ;;  %v4538_v56 = vpop.f32.mrf.mxu0  ;;  %v3919_v2 = vld [vmem:[#allocation5 + $0x610] ss:$24 sps:$4 sm:$0xff]  }
 0x170   : > { %v4540_v54 = vpop.f32.mrf.mxu1  ;;  %2842 = vmatpush1.bf16.msra.mxu0 %v3913_v44 }
 0x171   : > { %3424 = vmatpush1.bf16.msra.mxu1 %v3913_v44  ;;  %2843 = vmatprep.subr.bf16.mxu0 %v3918_v28  ;;  %v4542_v33 = vpop.f32.mrf.mxu0  ;;  %v3931_v44 = vld [vmem:[#allocation5 + $0x850] ss:$24 sps:$4 sm:$0xff]  }
 0x172   : > { %3409 = vmatprep.subr.bf16.mxu1 %v3918_v28  ;;  %v4544_v36 = vpop.f32.mrf.mxu1  ;;  %v3936_v28 = vld [vmem:[#allocation5 + $0x824] ss:$24 sps:$4 sm:$0xff]  }
 0x173   : > { %2708 = vmatmul.mubr.bf16.gmra.mxu0 %v4344_v12  ;;  %v4547_v37 = vpop.f32.mrf.mxu0 }
 0x174   : > { %2801 = vmatmul.mubr.bf16.gmra.mxu1 %v4346_v13  ;;  %v4550_v1 = vpop.f32.mrf.mxu1  ;;  %2844 = vmatpush1.bf16.msra.mxu0 %v3916_v57  ;;  %v3922_v13 = vld [vmem:[#allocation5 + $0x8e0] ss:$24 sps:$4 sm:$0xff]  }
 0x175   : > { %3425 = vmatpush1.bf16.msra.mxu1 %v3916_v57  ;;  %2845 = vmatprep.subr.bf16.mxu0 %v3921_v32  ;;  %v4552_v46 = vpop.f32.mrf.mxu0  ;;  %v617_v57 = vlaneseq }
 0x176   : > { %3410 = vmatprep.subr.bf16.mxu1 %v3921_v32  ;;  %v4554_v47 = vpop.f32.mrf.mxu1  ;;  %2717 = vmatprep.mubr.bf16.mxu0 %v4350_v25  ;;  %v3925_v25 = vld [vmem:[#allocation5 + $0x8b0] ss:$24 sps:$4 sm:$0xff]  }
 0x177   : > { %2810 = vmatprep.mubr.bf16.mxu1 %v4352_v26  ;;  %v4558_v12 = vpop.f32.mrf.mxu0  ;;  %v3930_v26 = vld [vmem:[#allocation5 + $0x884] ss:$24 sps:$4 sm:$0xff]  }
 0x178   : > { %v4560_v51 = vpop.f32.mrf.mxu1  ;;  %2846 = vmatpush1.bf16.msra.mxu0 %v3919_v2 }
 0x179   : > { %3426 = vmatpush1.bf16.msra.mxu1 %v3919_v2  ;;  %2847 = vmatprep.subr.bf16.mxu0 %v3924_v42  ;;  %v4562_v14 = vpop.f32.mrf.mxu0  ;;  %v3939_v2 = vld [vmem:[#allocation5 + $0x7f4] ss:$24 sps:$4 sm:$0xff]  }
 0x17a   : > { %3411 = vmatprep.subr.bf16.mxu1 %v3924_v42  ;;  %v4564_v7 = vpop.f32.mrf.mxu1  ;;  %v4590_v42 = vshrl.u32 %v617_v57, 7  ;;  %v3945_v57 = vld [vmem:[#allocation5 + $0x794] ss:$24 sps:$4 sm:$0xff]  }
 0x17b   : > { %2718 = vmatmul.mubr.bf16.gmra.mxu0 %v4364_v40  ;;  %v4568_v24 = vpop.f32.mrf.mxu0 }
 0x17c   : > { %2811 = vmatmul.mubr.bf16.gmra.mxu1 %v4366_v41  ;;  %2848 = vmatpush2.bf16.msra.mxu0 %v3922_v13  ;;  %v4570_v10 = vpop.f32.mrf.mxu1  ;;  %v3933_v41 = vld [vmem:[#allocation5 + $0x854] ss:$24 sps:$4 sm:$0xff]   ;;  %5071 = vst [vmem:[#allocation12_spill] sm:$0xff] %v4590_v42 }
 0x17d   : > { %3427 = vmatpush2.bf16.msra.mxu1 %v3922_v13  ;;  %2849 = vmatprep.subr.bf16.mxu0 %v3927_v61  ;;  %v4574_v40 = vpop.f32.mrf.mxu0  ;;  %v3937_v13 = vld [vmem:[#allocation5 + $0x7f0] ss:$24 sps:$4 sm:$0xff]  }
 0x17e   : > { %3412 = vmatprep.subr.bf16.mxu1 %v3927_v61  ;;  %2727 = vmatprep.mubr.bf16.mxu0 %v4370_v50  ;;  %v4576_v20 = vpop.f32.mrf.mxu1 }
 0x17f   : > { %2820 = vmatprep.mubr.bf16.mxu1 %v4373_v52  ;;  %v4580_v50 = vpop.f32.mrf.mxu0 }
 0x180   : > { %2850 = vmatpush2.bf16.msra.mxu0 %v3925_v25  ;;  %v4582_v52 = vpop.f32.mrf.mxu1 }
 0x181   : > { %3428 = vmatpush2.bf16.msra.mxu1 %v3925_v25  ;;  %2851 = vmatprep.subr.bf16.mxu0 %v3930_v26  ;;  %v4586_v32 = vpop.f32.mrf.mxu0  ;;  %v619_v25 = vsub.s32 0, %v4590_v42 }
 0x182   : > { %3413 = vmatprep.subr.bf16.mxu1 %v3930_v26  ;;  %v4597_v26 = vld [vmem:[#allocation7] sm:$0x3f] }
 0x183   : > { %2728 = vmatmul.mubr.bf16.gmra.mxu0 %v4382_v0  ;;  %v3934_v0 = vld [vmem:[#allocation5 + $0x820] ss:$24 sps:$4 sm:$0xff]   ;;  %v4592_v61 = vpop.f32.mrf.mxu0  ;;  %5073 = vst [vmem:[#allocation14_spill] sm:$0xff] %v4597_v26 }
 0x184   : > { %2821 = vmatmul.mubr.bf16.gmra.mxu1 %v4384_v3  ;;  %2852 = vmatpush2.bf16.msra.mxu0 %v3928_v35  ;;  %v4588_v3 = vpop.f32.mrf.mxu1 }
 0x185   : > { %3429 = vmatpush2.bf16.msra.mxu1 %v3928_v35  ;;  %2853 = vmatprep.subr.bf16.mxu0 %v3933_v41  ;;  %v623_v35 = vsub.s32 1, %v4590_v42 }
 0x186   : > { %3414 = vmatprep.subr.bf16.mxu1 %v3933_v41  ;;  %2863 = vmatprep.mubr.bf16.mxu0 %v4388_v8  ;;  %v4594_v8 = vpop.f32.mrf.mxu1  ;;  %v3940_v41 = vld [vmem:[#allocation5 + $0x7c0] ss:$24 sps:$4 sm:$0xff]  }
 0x187   : > { %2893 = vmatprep.mubr.bf16.mxu1 %v4424_v39  ;;  %5072 = vst [vmem:[#allocation13_spill] sm:$0xff] %v4594_v8  ;;  %v3942_v39 = vld [vmem:[#allocation5 + $0x7c4] ss:$24 sps:$4 sm:$0xff]   ;;  %v3943_v8 = vld [vmem:[#allocation5 + $0x790] ss:$24 sps:$4 sm:$0xff]  }
 0x188   : > { %2854 = vmatpush2.bf16.msra.mxu0 %v3931_v44 }
 0x189   : > { %3430 = vmatpush2.bf16.msra.mxu1 %v3931_v44  ;;  %2855 = vmatprep.subr.bf16.mxu0 %v3936_v28  ;;  %v4600_v44 = vpop.f32.mrf.mxu0 }
 0x18a   : > { %3415 = vmatprep.subr.bf16.mxu1 %v3936_v28  ;;  %v4602_v28 = vpop.f32.mrf.mxu1 }
 0x18b   : > { %5074 = vst [vmem:[#allocation15_spill] sm:$0xff] %v4602_v28  ;;  %v4610_v42 = vpop.f32.mrf.mxu0 }
 0x18c   : > { %2856 = vmatpush2.bf16.msra.mxu0 %v3934_v0 }
 0x18d   : > { %3431 = vmatpush2.bf16.msra.mxu1 %v3934_v0  ;;  %2857 = vmatprep.subr.bf16.mxu0 %v3939_v2  ;;  %v4605_v0 = vrot.slane %v4597_v26, %v619_v25  ;;  %v4618_v25 = vpop.f32.mrf.mxu0 }
 0x18e   : > { %3416 = vmatprep.subr.bf16.mxu1 %v3939_v2  ;;  %v4608_v2 = vrot.slane %v4597_v26, %v623_v35 }
 0x18f   : > { %v2122_v28 = vadd.f32 %v4486_v48, %v4605_v0  ;;  %v2126_v26 = vadd.f32 %v4498_v62, %v4605_v0 }
 0x190   : > { %2858 = vmatpush2.bf16.msra.mxu0 %v3937_v13 }
 0x191   : > { %3432 = vmatpush2.bf16.msra.mxu1 %v3937_v13  ;;  %2859 = vmatprep.subr.bf16.mxu0 %v3942_v39  ;;  %v4612_v13 = vpop.f32.mrf.mxu1  ;;  %v2219_v62 = vadd.f32 %v4500_v63, %v2126_v26  ;;  %v2134_v63 = vadd.f32 %v4512_v11, %v4608_v2 }
 0x192   : > { %3417 = vmatprep.subr.bf16.mxu1 %v3942_v39  ;;  %5075 = vst [vmem:[#allocation16_spill] sm:$0xff] %v4612_v13  ;;  %v2124_v39 = vadd.f32 %v4492_v58, %v4608_v2  ;;  %v2128_v58 = vadd.f32 %v4502_v15, %v4608_v2 }
 0x193   : > { %v4620_v35 = vpop.f32.mrf.mxu1  ;;  %v2227_v11 = vadd.f32 %v4514_v16, %v2134_v63  ;;  %v2148_v63 = vadd.f32 %v4542_v33, %v4608_v2  ;;  %v2154_v33 = vadd.f32 %v4552_v46, %v4608_v2  ;;  %v2158_v46 = vadd.f32 %v4562_v14, %v4608_v2 }
 0x194   : > { %2860 = vmatpush2.bf16.msra.mxu0 %v3940_v41  ;;  %v2217_v48 = vadd.f32 %v4494_v59, %v2124_v39  ;;  %v2136_v39 = vadd.f32 %v4518_v34, %v4605_v0  ;;  %v2164_v14 = vadd.f32 %v4574_v40, %v4608_v2  ;;  %v2168_v40 = vadd.f32 %v4586_v32, %v4608_v2 }
 0x195   : > { %3433 = vmatpush2.bf16.msra.mxu1 %v3940_v41  ;;  %2861 = vmatprep.subr.bf16.mxu0 %v3945_v57  ;;  %v2215_v41 = vadd.f32 %v4488_v49, %v2122_v28  ;;  %v2174_v32 = vadd.f32 %v4600_v44, %v4608_v2  ;;  %v2178_v44 = vadd.f32 %v4618_v25, %v4608_v2 }
 0x196   : > { %3418 = vmatprep.subr.bf16.mxu1 %v3945_v57 }
 0x198   : > { %2862 = vmatpush2.bf16.msra.mxu0 %v3943_v8 }
 0x199   : > { %3434 = vmatpush2.bf16.msra.mxu1 %v3943_v8 }
 0x19b   : > { %v2307_v13 = vpop.f32.mrf.mxu0  ;;  %2864 = vmatmul.mubr.bf16.vlgmr.msra.gmra.mxu0 %v4396_v45  ;;  %v2132_v45 = vadd.f32 %v4507_v9, %v4605_v0 }
 0x19c   : > { %v4625_v57 = vpop.f32.mrf.mxu1  ;;  %2894 = vmatmul.mubr.bf16.vlgmr.msra.gmra.mxu1 %v4432_v55  ;;  %v2308_v8 = vadd.f32 %v2307_v13, %v2215_v41  ;;  %2873 = vmatprep.mubr.bf16.mxu0 %v4400_v60 }
 0x19d   : > { %2903 = vmatprep.mubr.bf16.mxu1 %v4436_v5  ;;  %v2309_v49 = vpop.f32.mrf.mxu0  ;;  %v2221_v5 = vadd.f32 %v4504_v4, %v2128_v58  ;;  %v2225_v13 = vadd.f32 %v4510_v23, %v2132_v45  ;;  %v2138_v58 = vadd.f32 %v4522_v21, %v4608_v2 }
 0x19e   : > { %v4634_v28 = vpop.f32.mrf.mxu1  ;;  %2924 = vst [vmem:[%s4641_s18] sm:$0xff] %v2308_v8  ;;  %v2310_v55 = vadd.f32 %v2309_v49, %v2217_v48 }
 0x19f   : > { %v2311_v59 = vpop.f32.mrf.mxu0  ;;  %v2231_v21 = vadd.f32 %v4524_v22, %v2138_v58 }
 0x1a0   : > { %v4644_v60 = vpop.f32.mrf.mxu1  ;;  %2925 = vst [vmem:[%s4641_s18 + $0x8] sm:$0xff] %v2310_v55  ;;  %v2312_v15 = vadd.f32 %v2311_v59, %v2219_v62 }
 0x1a1   : > { %v2313_v9 = vpop.f32.mrf.mxu0 }
 0x1a2   : > { %v4650_v26 = vpop.f32.mrf.mxu1  ;;  %2930 = vst [vmem:[%s4641_s18 + $0x30] sm:$0xff] %v2312_v15  ;;  %v2314_v41 = vadd.f32 %v2313_v9, %v2221_v5 }
 0x1a3   : > { %v2317_v48 = vpop.f32.mrf.mxu0  ;;  %2874 = vmatmul.mubr.bf16.gmra.mxu0 %v4408_v6  ;;  %v2229_v6 = vadd.f32 %v4520_v17, %v2136_v39 }
 0x1a4   : > { %2904 = vmatmul.mubr.bf16.gmra.mxu1 %v4444_v18  ;;  %v4658_v4 = vpop.f32.mrf.mxu1  ;;  %2931 = vst [vmem:[%s4641_s18 + $0x38] sm:$0xff] %v2314_v41  ;;  %v2318_v23 = vadd.f32 %v2317_v48, %v2225_v13  ;;  %2883 = vmatprep.mubr.bf16.mxu0 %v4412_v19  ;;  %v2142_v18 = vadd.f32 %v4527_v27, %v4605_v0 }
 0x1a5   : > { %2913 = vmatprep.mubr.bf16.mxu1 %v4448_v31  ;;  %v2319_v34 = vpop.f32.mrf.mxu0  ;;  %v2144_v19 = vadd.f32 %v4532_v29, %v4608_v2  ;;  %v2146_v27 = vadd.f32 %v4538_v56, %v4605_v0 }
 0x1a6   : > { %v4666_v8 = vpop.f32.mrf.mxu1  ;;  %2936 = vst [vmem:[%s4641_s18 + $0x60] sm:$0xff] %v2318_v23  ;;  %v2320_v16 = vadd.f32 %v2319_v34, %v2227_v11  ;;  %v2235_v17 = vadd.f32 %v4530_v43, %v2142_v18 }
 0x1a7   : > { %v2321_v49 = vpop.f32.mrf.mxu0  ;;  %v2237_v29 = vadd.f32 %v4534_v53, %v2144_v19  ;;  %v2239_v9 = vadd.f32 %v4540_v54, %v2146_v27  ;;  %v2241_v53 = vadd.f32 %v4544_v36, %v2148_v63  ;;  %v2247_v36 = vadd.f32 %v4554_v47, %v2154_v33 }
 0x1a8   : > { %v4672_v62 = vpop.f32.mrf.mxu1  ;;  %2937 = vst [vmem:[%s4641_s18 + $0x68] sm:$0xff] %v2320_v16  ;;  %v2322_v31 = vadd.f32 %v2321_v49, %v2229_v6  ;;  %v2251_v47 = vadd.f32 %v4564_v7, %v2158_v46  ;;  %v2257_v7 = vadd.f32 %v4576_v20, %v2164_v14  ;;  %v2261_v20 = vadd.f32 %v4588_v3, %v2168_v40  ;;  %v5080_v14 = vld [vmem:[#allocation14_spill] sm:$0xff] }
 0x1a9   : > { %v2323_v45 = vpop.f32.mrf.mxu0 }
 0x1aa   : > { %v4678_v55 = vpop.f32.mrf.mxu1  ;;  %2942 = vst [vmem:[%s4641_s18 + $0x90] sm:$0xff] %v2322_v31  ;;  %v2324_v59 = vadd.f32 %v2323_v45, %v2231_v21 }
 0x1ab   : > { %v2327_v5 = vpop.f32.mrf.mxu0  ;;  %2884 = vmatmul.mubr.bf16.gmra.mxu0 %v4420_v30  ;;  %v2152_v30 = vadd.f32 %v4547_v37, %v4605_v0  ;;  %v2156_v37 = vadd.f32 %v4558_v12, %v4605_v0  ;;  %v2162_v12 = vadd.f32 %v4568_v24, %v4605_v0  ;;  %v2166_v24 = vadd.f32 %v4580_v50, %v4605_v0 }
 0x1ac   : > { %2914 = vmatmul.mubr.bf16.gmra.mxu1 %v4456_v38  ;;  %v4686_v22 = vpop.f32.mrf.mxu1  ;;  %2943 = vst [vmem:[%s4641_s18 + $0x98] sm:$0xff] %v2324_v59  ;;  %v2328_v43 = vadd.f32 %v2327_v5, %v2235_v17  ;;  %v2172_v50 = vadd.f32 %v4592_v61, %v4605_v0  ;;  %v2176_v61 = vadd.f32 %v4610_v42, %v4605_v0 }
 0x1ad   : > { %v2329_v15 = vpop.f32.mrf.mxu0  ;;  %v2245_v54 = vadd.f32 %v4550_v1, %v2152_v30  ;;  %v2249_v1 = vadd.f32 %v4560_v51, %v2156_v37  ;;  %v2255_v51 = vadd.f32 %v4570_v10, %v2162_v12  ;;  %v2259_v10 = vadd.f32 %v4582_v52, %v2166_v24  ;;  %v5079_v12 = vld [vmem:[#allocation12_spill] sm:$0xff] }
 0x1ae   : > { %v4692_v56 = vpop.f32.mrf.mxu1  ;;  %2948 = vst [vmem:[%s4641_s18 + $0xc0] sm:$0xff] %v2328_v43  ;;  %v2330_v38 = vadd.f32 %v2329_v15, %v2237_v29  ;;  %v2271_v0 = vadd.f32 %v4620_v35, %v2178_v44 }
 0x1af   : > { %v2331_v13 = vpop.f32.mrf.mxu0 }
 0x1b0   : > { %v4698_v39 = vpop.f32.mrf.mxu1  ;;  %2949 = vst [vmem:[%s4641_s18 + $0xc8] sm:$0xff] %v2330_v38  ;;  %v2332_v41 = vadd.f32 %v2331_v13, %v2239_v9  ;;  %v5076_v13 = vld [vmem:[#allocation13_spill] sm:$0xff] }
 0x1b1   : > { %v2333_v48 = vpop.f32.mrf.mxu0  ;;  %v2265_v52 = vadd.f32 %v5076_v13, %v2172_v50 }
 0x1b2   : > { %v4704_v11 = vpop.f32.mrf.mxu1  ;;  %2954 = vst [vmem:[%s4641_s18 + $0xf0] sm:$0xff] %v2332_v41  ;;  %v2334_v58 = vadd.f32 %v2333_v48, %v2241_v53  ;;  %v5077_v41 = vld [vmem:[#allocation15_spill] sm:$0xff] }
 0x1b3   : > { %v2337_v23 = vpop.f32.mrf.mxu0  ;;  %v2267_v3 = vadd.f32 %v5077_v41, %v2174_v32 }
 0x1b4   : > { %v4710_v34 = vpop.f32.mrf.mxu1  ;;  %2955 = vst [vmem:[%s4641_s18 + $0xf8] sm:$0xff] %v2334_v58  ;;  %v2338_v6 = vadd.f32 %v2337_v23, %v2245_v54  ;;  %v5078_v58 = vld [vmem:[#allocation16_spill] sm:$0xff] }
 0x1b5   : > { %v2339_v18 = vpop.f32.mrf.mxu0  ;;  %v2269_v23 = vadd.f32 %v5078_v58, %v2176_v61 }
 0x1b6   : > { %v4716_v16 = vpop.f32.mrf.mxu1  ;;  %2960 = vst [vmem:[%s4641_s18 + $0x120] sm:$0xff] %v2338_v6  ;;  %v2340_v49 = vadd.f32 %v2339_v18, %v2247_v36 }
 0x1b7   : > { %v2341_v21 = vpop.f32.mrf.mxu0 }
 0x1b8   : > { %v4722_v19 = vpop.f32.mrf.mxu1  ;;  %2961 = vst [vmem:[%s4641_s18 + $0x128] sm:$0xff] %v2340_v49  ;;  %v2342_v31 = vadd.f32 %v2341_v21, %v2249_v1  ;;  %v627_v49 = vsub.s32 2, %v5079_v12  ;;  %v631_v21 = vsub.s32 3, %v5079_v12 }
 0x1b9   : > { %v2343_v45 = vpop.f32.mrf.mxu0 }
 0x1ba   : > { %v4728_v17 = vpop.f32.mrf.mxu1  ;;  %2966 = vst [vmem:[%s4641_s18 + $0x150] sm:$0xff] %v2342_v31  ;;  %v2344_v27 = vadd.f32 %v2343_v45, %v2251_v47  ;;  %v4777_v35 = vrot.slane %v5080_v14, %v627_v49  ;;  %v4780_v31 = vrot.slane %v5080_v14, %v631_v21 }
 0x1bb   : > { %v2347_v59 = vpop.f32.mrf.mxu0 }
 0x1bc   : > { %2967 = vst [vmem:[%s4641_s18 + $0x158] sm:$0xff] %v2344_v27  ;;  %v2348_v5 = vadd.f32 %v2347_v59, %v2255_v51  ;;  %v4738_v63 = vpop.f32.mrf.mxu1  ;;  %v2401_v51 = vadd.f32 %v4625_v57, %v4777_v35  ;;  %v2403_v59 = vadd.f32 %v4634_v28, %v4780_v31  ;;  %v2407_v57 = vadd.f32 %v4650_v26, %v4780_v31 }
 0x1bd   : > { %v2349_v29 = vpop.f32.mrf.mxu0  ;;  %v2415_v44 = vadd.f32 %v4672_v62, %v4777_v35  ;;  %v2423_v21 = vadd.f32 %v4692_v56, %v4780_v31 }
 0x1be   : > { %2972 = vst [vmem:[%s4641_s18 + $0x180] sm:$0xff] %v2348_v5  ;;  %v2350_v43 = vadd.f32 %v2349_v29, %v2257_v7  ;;  %v4748_v38 = vpop.f32.mrf.mxu1  ;;  %v2405_v29 = vadd.f32 %v4644_v60, %v4777_v35 }
 0x1bf   : > { %v2351_v15 = vpop.f32.mrf.mxu0 }
 0x1c0   : > { %2973 = vst [vmem:[%s4641_s18 + $0x188] sm:$0xff] %v2350_v43  ;;  %v2352_v9 = vadd.f32 %v2351_v15, %v2259_v10  ;;  %v4758_v37 = vpop.f32.mrf.mxu1 }
 0x1c1   : > { %v2353_v30 = vpop.f32.mrf.mxu0 }
 0x1c2   : > { %2978 = vst [vmem:[%s4641_s18 + $0x1b0] sm:$0xff] %v2352_v9  ;;  %v2354_v53 = vadd.f32 %v2353_v30, %v2261_v20  ;;  %v4764_v18 = vpop.f32.mrf.mxu1  ;;  %v2411_v30 = vadd.f32 %v4658_v4, %v4777_v35 }
 0x1c3   : > { %v2357_v33 = vpop.f32.mrf.mxu0 }
 0x1c4   : > { %2979 = vst [vmem:[%s4641_s18 + $0x1b8] sm:$0xff] %v2354_v53  ;;  %v2358_v48 = vadd.f32 %v2357_v33, %v2265_v52  ;;  %v4768_v25 = vpop.f32.mrf.mxu1  ;;  %v2413_v53 = vadd.f32 %v4666_v8, %v4780_v31 }
 0x1c5   : > { %v2359_v54 = vpop.f32.mrf.mxu0 }
 0x1c6   : > { %2984 = vst [vmem:[%s4641_s18 + $0x1e0] sm:$0xff] %v2358_v48  ;;  %v2360_v36 = vadd.f32 %v2359_v54, %v2267_v3  ;;  %v4770_v1 = vpop.f32.mrf.mxu1 }
 0x1c7   : > { %v2361_v42 = vpop.f32.mrf.mxu0 }
 0x1c8   : > { %2985 = vst [vmem:[%s4641_s18 + $0x1e8] sm:$0xff] %v2360_v36  ;;  %v2362_v46 = vadd.f32 %v2361_v42, %v2269_v23  ;;  %v4774_v47 = vpop.f32.mrf.mxu1  ;;  %v2417_v23 = vadd.f32 %v4678_v55, %v4780_v31 }
 0x1c9   : > { %v2363_v6 = vpop.f32.mrf.mxu0 }
 0x1ca   : > { %2990 = vst [vmem:[%s4641_s18 + $0x210] sm:$0xff] %v2362_v46  ;;  %v2364_v2 = vadd.f32 %v2363_v6, %v2271_v0  ;;  %v4782_v45 = vpop.f32.mrf.mxu1  ;;  %v2421_v46 = vadd.f32 %v4686_v22, %v4777_v35 }
 0x1cc   : > { %2991 = vst [vmem:[%s4641_s18 + $0x218] sm:$0xff] %v2364_v2 }
 0x1db   : > { %v2493_v24 = vpop.f32.mrf.mxu0 }
 0x1dc   : > { %v2586_v27 = vpop.f32.mrf.mxu1  ;;  %v2494_v7 = vadd.f32 %v2493_v24, %v2401_v51 }
 0x1dd   : > { %v2495_v40 = vpop.f32.mrf.mxu0 }
 0x1de   : > { %v2588_v5 = vpop.f32.mrf.mxu1  ;;  %v2587_v10 = vadd.f32 %v2586_v27, %v2494_v7  ;;  %v2496_v50 = vadd.f32 %v2495_v40, %v2403_v59  ;;  %v2425_v59 = vadd.f32 %v4698_v39, %v4777_v35 }
 0x1df   : > { %v2497_v43 = vpop.f32.mrf.mxu0 }
 0x1e0   : > { %v2590_v15 = vpop.f32.mrf.mxu1  ;;  %2926 = vst [vmem:[%s4641_s18 + $0x10] sm:$0xff] %v2587_v10  ;;  %v2589_v20 = vadd.f32 %v2588_v5, %v2496_v50  ;;  %v2498_v32 = vadd.f32 %v2497_v43, %v2405_v29  ;;  %v2427_v29 = vadd.f32 %v4704_v11, %v4780_v31 }
 0x1e1   : > { %v2499_v28 = vpop.f32.mrf.mxu0 }
 0x1e2   : > { %v2592_v9 = vpop.f32.mrf.mxu1  ;;  %2927 = vst [vmem:[%s4641_s18 + $0x18] sm:$0xff] %v2589_v20  ;;  %v2591_v13 = vadd.f32 %v2590_v15, %v2498_v32  ;;  %v2500_v60 = vadd.f32 %v2499_v28, %v2407_v57  ;;  %v2431_v15 = vadd.f32 %v4710_v34, %v4777_v35  ;;  %v2433_v28 = vadd.f32 %v4716_v16, %v4780_v31 }
 0x1e3   : > { %v2503_v52 = vpop.f32.mrf.mxu0 }
 0x1e4   : > { %v2596_v61 = vpop.f32.mrf.mxu1  ;;  %2932 = vst [vmem:[%s4641_s18 + $0x40] sm:$0xff] %v2591_v13  ;;  %v2593_v26 = vadd.f32 %v2592_v9, %v2500_v60  ;;  %v2504_v33 = vadd.f32 %v2503_v52, %v2411_v30  ;;  %v2435_v60 = vadd.f32 %v4722_v19, %v4777_v35 }
 0x1e5   : > { %v2505_v41 = vpop.f32.mrf.mxu0 }
 0x1e6   : > { %v2598_v3 = vpop.f32.mrf.mxu1  ;;  %2933 = vst [vmem:[%s4641_s18 + $0x48] sm:$0xff] %v2593_v26  ;;  %v2506_v4 = vadd.f32 %v2505_v41, %v2413_v53  ;;  %v2597_v48 = vadd.f32 %v2596_v61, %v2504_v33  ;;  %v2437_v26 = vadd.f32 %v4728_v17, %v4780_v31 }
 0x1e7   : > { %v2507_v54 = vpop.f32.mrf.mxu0 }
 0x1e8   : > { %v2600_v58 = vpop.f32.mrf.mxu1  ;;  %2938 = vst [vmem:[%s4641_s18 + $0x70] sm:$0xff] %v2597_v48  ;;  %v2508_v8 = vadd.f32 %v2507_v54, %v2415_v44  ;;  %v2599_v36 = vadd.f32 %v2598_v3, %v2506_v4  ;;  %v2441_v44 = vadd.f32 %v4738_v63, %v4777_v35 }
 0x1e9   : > { %v2509_v42 = vpop.f32.mrf.mxu0 }
 0x1ea   : > { %v2602_v0 = vpop.f32.mrf.mxu1  ;;  %2939 = vst [vmem:[%s4641_s18 + $0x78] sm:$0xff] %v2599_v36  ;;  %v2510_v62 = vadd.f32 %v2509_v42, %v2417_v23  ;;  %v2601_v6 = vadd.f32 %v2600_v58, %v2508_v8  ;;  %v2443_v58 = vadd.f32 %v4748_v38, %v4780_v31  ;;  %v2445_v42 = vadd.f32 %v4758_v37, %v4777_v35 }
 0x1eb   : > { %v2513_v2 = vpop.f32.mrf.mxu0 }
 0x1ec   : > { %v2606_v49 = vpop.f32.mrf.mxu1  ;;  %2944 = vst [vmem:[%s4641_s18 + $0xa0] sm:$0xff] %v2601_v6  ;;  %v2514_v55 = vadd.f32 %v2513_v2, %v2421_v46  ;;  %v2603_v51 = vadd.f32 %v2602_v0, %v2510_v62  ;;  %v2447_v6 = vadd.f32 %v4764_v18, %v4780_v31 }
 0x1ed   : > { %v2515_v24 = vpop.f32.mrf.mxu0 }
 0x1ee   : > { %v2608_v27 = vpop.f32.mrf.mxu1  ;;  %2945 = vst [vmem:[%s4641_s18 + $0xa8] sm:$0xff] %v2603_v51  ;;  %v2516_v22 = vadd.f32 %v2515_v24, %v2423_v21  ;;  %v2607_v7 = vadd.f32 %v2606_v49, %v2514_v55  ;;  %v2451_v55 = vadd.f32 %v4768_v25, %v4777_v35 }
 0x1ef   : > { %v2517_v40 = vpop.f32.mrf.mxu0 }
 0x1f0   : > { %v2610_v5 = vpop.f32.mrf.mxu1  ;;  %2950 = vst [vmem:[%s4641_s18 + $0xd0] sm:$0xff] %v2607_v7  ;;  %v2518_v56 = vadd.f32 %v2517_v40, %v2425_v59  ;;  %v2609_v10 = vadd.f32 %v2608_v27, %v2516_v22  ;;  %v2453_v59 = vadd.f32 %v4770_v1, %v4780_v31 }
 0x1f1   : > { %v2519_v50 = vpop.f32.mrf.mxu0 }
 0x1f2   : > { %v2612_v43 = vpop.f32.mrf.mxu1  ;;  %2951 = vst [vmem:[%s4641_s18 + $0xd8] sm:$0xff] %v2609_v10  ;;  %v2520_v39 = vadd.f32 %v2519_v50, %v2427_v29  ;;  %v2611_v57 = vadd.f32 %v2610_v5, %v2518_v56  ;;  %v2455_v5 = vadd.f32 %v4774_v47, %v4777_v35  ;;  %v2457_v50 = vadd.f32 %v4782_v45, %v4780_v31 }
 0x1f3   : > { %v2523_v20 = vpop.f32.mrf.mxu0 }
 0x1f4   : > { %v2616_v32 = vpop.f32.mrf.mxu1  ;;  %2956 = vst [vmem:[%s4641_s18 + $0x100] sm:$0xff] %v2611_v57  ;;  %v2524_v11 = vadd.f32 %v2523_v20, %v2431_v15  ;;  %v2613_v9 = vadd.f32 %v2612_v43, %v2520_v39 }
 0x1f5   : > { %v2525_v30 = vpop.f32.mrf.mxu0 }
 0x1f6   : > { %v2618_v13 = vpop.f32.mrf.mxu1  ;;  %2957 = vst [vmem:[%s4641_s18 + $0x108] sm:$0xff] %v2613_v9  ;;  %v2526_v34 = vadd.f32 %v2525_v30, %v2433_v28  ;;  %v2617_v52 = vadd.f32 %v2616_v32, %v2524_v11 }
 0x1f7   : > { %v2527_v61 = vpop.f32.mrf.mxu0 }
 0x1f8   : > { %v2620_v53 = vpop.f32.mrf.mxu1  ;;  %2962 = vst [vmem:[%s4641_s18 + $0x130] sm:$0xff] %v2617_v52  ;;  %v2528_v16 = vadd.f32 %v2527_v61, %v2435_v60  ;;  %v2619_v33 = vadd.f32 %v2618_v13, %v2526_v34 }
 0x1f9   : > { %v2529_v41 = vpop.f32.mrf.mxu0 }
 0x1fa   : > { %v2622_v3 = vpop.f32.mrf.mxu1  ;;  %2963 = vst [vmem:[%s4641_s18 + $0x138] sm:$0xff] %v2619_v33  ;;  %v2530_v19 = vadd.f32 %v2529_v41, %v2437_v26  ;;  %v2621_v4 = vadd.f32 %v2620_v53, %v2528_v16 }
 0x1fb   : > { %v2533_v48 = vpop.f32.mrf.mxu0 }
 0x1fc   : > { %v2626_v54 = vpop.f32.mrf.mxu1  ;;  %2968 = vst [vmem:[%s4641_s18 + $0x160] sm:$0xff] %v2621_v4  ;;  %v2534_v17 = vadd.f32 %v2533_v48, %v2441_v44  ;;  %v2623_v23 = vadd.f32 %v2622_v3, %v2530_v19 }
 0x1fd   : > { %v2535_v8 = vpop.f32.mrf.mxu0 }
 0x1fe   : > { %v2628_v36 = vpop.f32.mrf.mxu1  ;;  %2969 = vst [vmem:[%s4641_s18 + $0x168] sm:$0xff] %v2623_v23  ;;  %v2536_v63 = vadd.f32 %v2535_v8, %v2443_v58  ;;  %v2627_v0 = vadd.f32 %v2626_v54, %v2534_v17 }
 0x1ff   : > { %v2537_v46 = vpop.f32.mrf.mxu0 }
 0x200   : > { %v2630_v62 = vpop.f32.mrf.mxu1  ;;  %2974 = vst [vmem:[%s4641_s18 + $0x190] sm:$0xff] %v2627_v0  ;;  %v2538_v38 = vadd.f32 %v2537_v46, %v2445_v42  ;;  %v2629_v2 = vadd.f32 %v2628_v36, %v2536_v63 }
 0x201   : > { %v2539_v49 = vpop.f32.mrf.mxu0 }
 0x202   : > { %v2632_v21 = vpop.f32.mrf.mxu1  ;;  %2975 = vst [vmem:[%s4641_s18 + $0x198] sm:$0xff] %v2629_v2  ;;  %v2540_v37 = vadd.f32 %v2539_v49, %v2447_v6  ;;  %v2631_v51 = vadd.f32 %v2630_v62, %v2538_v38 }
 0x203   : > { %v2543_v24 = vpop.f32.mrf.mxu0 }
 0x204   : > { %v2636_v27 = vpop.f32.mrf.mxu1  ;;  %2980 = vst [vmem:[%s4641_s18 + $0x1c0] sm:$0xff] %v2631_v51  ;;  %v2544_v18 = vadd.f32 %v2543_v24, %v2451_v55  ;;  %v2633_v22 = vadd.f32 %v2632_v21, %v2540_v37  ;;  %v635_v24 = vsub.s32 4, %v5079_v12 }
 0x205   : > { %v2545_v7 = vpop.f32.mrf.mxu0 }
 0x206   : > { %v2638_v40 = vpop.f32.mrf.mxu1  ;;  %2981 = vst [vmem:[%s4641_s18 + $0x1c8] sm:$0xff] %v2633_v22  ;;  %v2546_v25 = vadd.f32 %v2545_v7, %v2453_v59  ;;  %v2637_v29 = vadd.f32 %v2636_v27, %v2544_v18  ;;  %v639_v27 = vsub.s32 5, %v5079_v12  ;;  %v4909_v22 = vrot.slane %v5080_v14, %v635_v24 }
 0x207   : > { %v2547_v56 = vpop.f32.mrf.mxu0 }
 0x208   : > { %v2640_v10 = vpop.f32.mrf.mxu1  ;;  %2986 = vst [vmem:[%s4641_s18 + $0x1f0] sm:$0xff] %v2637_v29  ;;  %v2548_v1 = vadd.f32 %v2547_v56, %v2455_v5  ;;  %v2639_v43 = vadd.f32 %v2638_v40, %v2546_v25  ;;  %v4912_v7 = vrot.slane %v5080_v14, %v639_v27 }
 0x209   : > { %v2549_v15 = vpop.f32.mrf.mxu0 }
 0x20a   : > { %v2642_v39 = vpop.f32.mrf.mxu1  ;;  %2987 = vst [vmem:[%s4641_s18 + $0x1f8] sm:$0xff] %v2639_v43  ;;  %v2550_v57 = vadd.f32 %v2549_v15, %v2457_v50  ;;  %v2641_v20 = vadd.f32 %v2640_v10, %v2548_v1 }
 0x20c   : > { %2992 = vst [vmem:[%s4641_s18 + $0x220] sm:$0xff] %v2641_v20  ;;  %v2643_v32 = vadd.f32 %v2642_v39, %v2550_v57 }
 0x20e   : > { %2993 = vst [vmem:[%s4641_s18 + $0x228] sm:$0xff] %v2643_v32 }
 0x21b   : > { %v2679_v47 = vpop.f32.mrf.mxu0 }
 0x21c   : > { %v2772_v35 = vpop.f32.mrf.mxu1  ;;  %v2680_v25 = vadd.f32 %v2679_v47, %v4909_v22 }
 0x21d   : > { %v2681_v28 = vpop.f32.mrf.mxu0 }
 0x21e   : > { %v2774_v11 = vpop.f32.mrf.mxu1  ;;  %v2682_v12 = vadd.f32 %v2681_v28, %v4912_v7  ;;  %v2773_v14 = vadd.f32 %v2772_v35, %v2680_v25 }
 0x21f   : > { %v2683_v9 = vpop.f32.mrf.mxu0 }
 0x220   : > { %v4856_v30 = vpop.f32.mrf.mxu1  ;;  %v2684_v10 = vadd.f32 %v2683_v9, %v4909_v22  ;;  %v2775_v39 = vadd.f32 %v2774_v11, %v2682_v12 }
 0x221   : > { %v2685_v13 = vpop.f32.mrf.mxu0 }
 0x222   : > { %v4858_v31 = vpop.f32.mrf.mxu1  ;;  %v2686_v57 = vadd.f32 %v2685_v13, %v4912_v7 }
 0x223   : > { %v2689_v45 = vpop.f32.mrf.mxu0 }
 0x224   : > { %v4860_v60 = vpop.f32.mrf.mxu1  ;;  %v2690_v35 = vadd.f32 %v2689_v45, %v4909_v22 }
 0x225   : > { %v4862_v34 = vpop.f32.mrf.mxu0 }
 0x226   : > { %v4864_v52 = vpop.f32.mrf.mxu1  ;;  %v2783_v12 = vadd.f32 %v4860_v60, %v2690_v35 }
 0x227   : > { %v4866_v61 = vpop.f32.mrf.mxu0 }
 0x228   : > { %v4868_v53 = vpop.f32.mrf.mxu1 }
 0x229   : > { %v4870_v26 = vpop.f32.mrf.mxu0 }
 0x22a   : > { %v4872_v16 = vpop.f32.mrf.mxu1  ;;  %v2696_v60 = vadd.f32 %v4870_v26, %v4912_v7 }
 0x22b   : > { %v4874_v33 = vpop.f32.mrf.mxu0 }
 0x22c   : > { %v4876_v41 = vpop.f32.mrf.mxu1 }
 0x22d   : > { %v4878_v3 = vpop.f32.mrf.mxu0 }
 0x22e   : > { %v4880_v44 = vpop.f32.mrf.mxu1 }
 0x22f   : > { %v4882_v19 = vpop.f32.mrf.mxu0 }
 0x230   : > { %v4884_v4 = vpop.f32.mrf.mxu1 }
 0x231   : > { %v4886_v48 = vpop.f32.mrf.mxu0 }
 0x232   : > { %v4888_v54 = vpop.f32.mrf.mxu1 }
 0x233   : > { %v2709_v58 = vpop.f32.mrf.mxu0 }
 0x234   : > { %v2802_v17 = vpop.f32.mrf.mxu1  ;;  %v2710_v29 = vadd.f32 %v2709_v58, %v4909_v22 }
 0x235   : > { %v2711_v23 = vpop.f32.mrf.mxu0 }
 0x236   : > { %v2804_v8 = vpop.f32.mrf.mxu1  ;;  %v2712_v56 = vadd.f32 %v2711_v23, %v4912_v7  ;;  %v2803_v43 = vadd.f32 %v2802_v17, %v2710_v29  ;;  %v2777_v23 = vadd.f32 %v4856_v30, %v2684_v10 }
 0x237   : > { %v2713_v36 = vpop.f32.mrf.mxu0 }
 0x238   : > { %v2806_v42 = vpop.f32.mrf.mxu1  ;;  %v2714_v15 = vadd.f32 %v2713_v36, %v4909_v22  ;;  %v2805_v47 = vadd.f32 %v2804_v8, %v2712_v56  ;;  %v2779_v8 = vadd.f32 %v4858_v31, %v2686_v57  ;;  %v2694_v31 = vadd.f32 %v4866_v61, %v4909_v22 }
 0x239   : > { %v2715_v63 = vpop.f32.mrf.mxu0 }
 0x23a   : > { %v2808_v0 = vpop.f32.mrf.mxu1  ;;  %v2716_v28 = vadd.f32 %v2715_v63, %v4912_v7  ;;  %v2807_v36 = vadd.f32 %v2806_v42, %v2714_v15  ;;  %v2692_v63 = vadd.f32 %v4862_v34, %v4912_v7 }
 0x23b   : > { %v2719_v46 = vpop.f32.mrf.mxu0 }
 0x23c   : > { %v2812_v62 = vpop.f32.mrf.mxu1  ;;  %v2720_v11 = vadd.f32 %v2719_v46, %v4909_v22  ;;  %v2809_v45 = vadd.f32 %v2808_v0, %v2716_v28 }
 0x23d   : > { %v2721_v6 = vpop.f32.mrf.mxu0 }
 0x23e   : > { %v4890_v38 = vpop.f32.mrf.mxu1  ;;  %v2722_v29 = vadd.f32 %v2721_v6, %v4912_v7  ;;  %v2813_v34 = vadd.f32 %v2812_v62, %v2720_v11 }
 0x23f   : > { %v2723_v2 = vpop.f32.mrf.mxu0 }
 0x240   : > { %v4892_v49 = vpop.f32.mrf.mxu1  ;;  %v2815_v61 = vadd.f32 %v4890_v38, %v2722_v29 }
 0x241   : > { %v4894_v21 = vpop.f32.mrf.mxu0 }
 0x242   : > { %v4896_v55 = vpop.f32.mrf.mxu1  ;;  %v2726_v62 = vadd.f32 %v4894_v21, %v4912_v7 }
 0x243   : > { %v4898_v37 = vpop.f32.mrf.mxu0 }
 0x244   : > { %v4900_v51 = vpop.f32.mrf.mxu1  ;;  %v2730_v38 = vadd.f32 %v4898_v37, %v4909_v22 }
 0x245   : > { %v4904_v59 = vpop.f32.mrf.mxu0 }
 0x246   : > { %v4906_v18 = vpop.f32.mrf.mxu1 }
 0x247   : > { %v4914_v40 = vpop.f32.mrf.mxu0 }
 0x248   : > { %v4916_v5 = vpop.f32.mrf.mxu1 }
 0x249   : > { %v4923_v50 = vpop.f32.mrf.mxu0 }
 0x24a   : > { %v4925_v1 = vpop.f32.mrf.mxu1 }
 0x25b   : > { %v2865_v20 = vpop.f32.mrf.mxu0 }
 0x25c   : > { %v2895_v32 = vpop.f32.mrf.mxu1  ;;  %v2866_v58 = vadd.f32 %v2865_v20, %v2773_v14  ;;  %v2724_v14 = vadd.f32 %v2723_v2, %v4909_v22  ;;  %v2787_v20 = vadd.f32 %v4868_v53, %v2694_v31  ;;  %v2702_v53 = vadd.f32 %v4878_v3, %v4912_v7 }
 0x25d   : > { %v2896_v9 = vadd.f32 %v2895_v32, %v2803_v43  ;;  %v2867_v17 = vpop.f32.mrf.mxu0  ;;  %v2785_v43 = vadd.f32 %v4864_v52, %v2692_v63  ;;  %v2700_v52 = vadd.f32 %v4874_v33, %v4909_v22 }
 0x25e   : > { %v2897_v24 = vpop.f32.mrf.mxu1  ;;  %2928 = vst [vmem:[%s4641_s18 + $0x20] sm:$0xff] %v2866_v58  ;;  %v2868_v13 = vadd.f32 %v2867_v17, %v2775_v39  ;;  %v2789_v58 = vadd.f32 %v4872_v16, %v2696_v60  ;;  %v2704_v16 = vadd.f32 %v4882_v19, %v4909_v22  ;;  %v2706_v19 = vadd.f32 %v4886_v48, %v4912_v7 }
 0x25f   : > { %2964 = vst [vmem:[%s4641_s18 + $0x140] sm:$0xff] %v2896_v9  ;;  %v2898_v27 = vadd.f32 %v2897_v24, %v2805_v47  ;;  %v2869_v30 = vpop.f32.mrf.mxu0  ;;  %v2817_v47 = vadd.f32 %v4892_v49, %v2724_v14  ;;  %v2732_v49 = vadd.f32 %v4904_v59, %v4912_v7  ;;  %v2793_v17 = vadd.f32 %v4876_v41, %v2700_v52 }
 0x260   : > { %v2899_v25 = vpop.f32.mrf.mxu1  ;;  %2929 = vst [vmem:[%s4641_s18 + $0x28] sm:$0xff] %v2868_v13  ;;  %v2870_v42 = vadd.f32 %v2869_v30, %v2777_v23  ;;  %v2819_v23 = vadd.f32 %v4896_v55, %v2726_v62  ;;  %v2734_v55 = vadd.f32 %v4914_v40, %v4909_v22  ;;  %v2795_v41 = vadd.f32 %v4880_v44, %v2702_v53 }
 0x261   : > { %2965 = vst [vmem:[%s4641_s18 + $0x148] sm:$0xff] %v2898_v27  ;;  %v2900_v46 = vadd.f32 %v2899_v25, %v2807_v36  ;;  %v2871_v56 = vpop.f32.mrf.mxu0  ;;  %v2823_v36 = vadd.f32 %v4900_v51, %v2730_v38  ;;  %v2825_v51 = vadd.f32 %v4906_v18, %v2732_v49  ;;  %v2736_v22 = vadd.f32 %v4923_v50, %v4912_v7 }
 0x262   : > { %v2901_v10 = vpop.f32.mrf.mxu1  ;;  %2934 = vst [vmem:[%s4641_s18 + $0x50] sm:$0xff] %v2870_v42  ;;  %v2872_v0 = vadd.f32 %v2871_v56, %v2779_v8  ;;  %v2797_v30 = vadd.f32 %v4884_v4, %v2704_v16  ;;  %v2827_v48 = vadd.f32 %v4916_v5, %v2734_v55 }
 0x263   : > { %2970 = vst [vmem:[%s4641_s18 + $0x170] sm:$0xff] %v2900_v46  ;;  %v2902_v6 = vadd.f32 %v2901_v10, %v2809_v45  ;;  %v2875_v15 = vpop.f32.mrf.mxu0  ;;  %v2799_v45 = vadd.f32 %v4888_v54, %v2706_v19  ;;  %v2829_v29 = vadd.f32 %v4925_v1, %v2736_v22 }
 0x264   : > { %v2905_v39 = vpop.f32.mrf.mxu1  ;;  %2935 = vst [vmem:[%s4641_s18 + $0x58] sm:$0xff] %v2872_v0  ;;  %v2876_v2 = vadd.f32 %v2875_v15, %v2783_v12 }
 0x265   : > { %2971 = vst [vmem:[%s4641_s18 + $0x178] sm:$0xff] %v2902_v6  ;;  %v2906_v57 = vadd.f32 %v2905_v39, %v2813_v34  ;;  %v2877_v26 = vpop.f32.mrf.mxu0 }
 0x266   : > { %v2907_v32 = vpop.f32.mrf.mxu1  ;;  %2940 = vst [vmem:[%s4641_s18 + $0x80] sm:$0xff] %v2876_v2  ;;  %v2878_v21 = vadd.f32 %v2877_v26, %v2785_v43 }
 0x267   : > { %2976 = vst [vmem:[%s4641_s18 + $0x1a0] sm:$0xff] %v2906_v57  ;;  %v2908_v28 = vadd.f32 %v2907_v32, %v2815_v61  ;;  %v2879_v33 = vpop.f32.mrf.mxu0 }
 0x268   : > { %v2909_v9 = vpop.f32.mrf.mxu1  ;;  %2941 = vst [vmem:[%s4641_s18 + $0x88] sm:$0xff] %v2878_v21  ;;  %v2880_v37 = vadd.f32 %v2879_v33, %v2787_v20 }
 0x269   : > { %2977 = vst [vmem:[%s4641_s18 + $0x1a8] sm:$0xff] %v2908_v28  ;;  %v2910_v35 = vadd.f32 %v2909_v9, %v2817_v47  ;;  %v2881_v3 = vpop.f32.mrf.mxu0 }
 0x26a   : > { %v2911_v24 = vpop.f32.mrf.mxu1  ;;  %2946 = vst [vmem:[%s4641_s18 + $0xb0] sm:$0xff] %v2880_v37  ;;  %v2882_v59 = vadd.f32 %v2881_v3, %v2789_v58 }
 0x26b   : > { %2982 = vst [vmem:[%s4641_s18 + $0x1d0] sm:$0xff] %v2910_v35  ;;  %v2912_v11 = vadd.f32 %v2911_v24, %v2819_v23  ;;  %v2885_v13 = vpop.f32.mrf.mxu0 }
 0x26c   : > { %v2915_v27 = vpop.f32.mrf.mxu1  ;;  %2947 = vst [vmem:[%s4641_s18 + $0xb8] sm:$0xff] %v2882_v59  ;;  %v2886_v40 = vadd.f32 %v2885_v13, %v2793_v17 }
 0x26d   : > { %2983 = vst [vmem:[%s4641_s18 + $0x1d8] sm:$0xff] %v2912_v11  ;;  %v2916_v8 = vadd.f32 %v2915_v27, %v2823_v36  ;;  %v2887_v63 = vpop.f32.mrf.mxu0 }
 0x26e   : > { %v2917_v44 = vpop.f32.mrf.mxu1  ;;  %2952 = vst [vmem:[%s4641_s18 + $0xe0] sm:$0xff] %v2886_v40  ;;  %v2888_v18 = vadd.f32 %v2887_v63, %v2795_v41 }
 0x26f   : > { %2988 = vst [vmem:[%s4641_s18 + $0x200] sm:$0xff] %v2916_v8  ;;  %v2918_v25 = vadd.f32 %v2917_v44, %v2825_v51  ;;  %v2889_v7 = vpop.f32.mrf.mxu0 }
 0x270   : > { %v2919_v50 = vpop.f32.mrf.mxu1  ;;  %2953 = vst [vmem:[%s4641_s18 + $0xe8] sm:$0xff] %v2888_v18  ;;  %v2890_v4 = vadd.f32 %v2889_v7, %v2797_v30 }
 0x271   : > { %2989 = vst [vmem:[%s4641_s18 + $0x208] sm:$0xff] %v2918_v25  ;;  %v2920_v5 = vadd.f32 %v2919_v50, %v2827_v48  ;;  %v2891_v42 = vpop.f32.mrf.mxu0 }
 0x272   : > { %v2921_v46 = vpop.f32.mrf.mxu1  ;;  %2958 = vst [vmem:[%s4641_s18 + $0x110] sm:$0xff] %v2890_v4  ;;  %v2892_v54 = vadd.f32 %v2891_v42, %v2799_v45 }
 0x273   : > { %2994 = vst [vmem:[%s4641_s18 + $0x230] sm:$0xff] %v2920_v5  ;;  %v2922_v1 = vadd.f32 %v2921_v46, %v2829_v29 }
 0x274   : > { %2959 = vst [vmem:[%s4641_s18 + $0x118] sm:$0xff] %v2892_v54 }
 0x275   : > { %2995 = vst [vmem:[%s4641_s18 + $0x238] sm:$0xff] %v2922_v1 }
 0x276   : > { %4039 = shalt.err (!%p4036_p7)
}
 0x277   : > { %s4040_s22 = scalar_lea.hbm %s5000_s28, 9216  ;;  %s4044_s27 = scalar_lea.hbm %s5051_s3, 36864 }
 0x278   : > { %p4041_p12 = scmp.ne.s32.totalorder %s5000_s28, %s4040_s22  ;;  %p4045_p4 = scmp.lt.s32.totalorder %s5000_s28, %s5051_s3 }
 0x279   : > { %p4046_p8 = scmp.lt.s32.totalorder %s4044_s27, %s4040_s22 }
 0x27a   : > { %p4042_p3 = pnand %p4041_p12, %p5081_p0 }
 0x27b   : > { %p4047_p9 = por %p4046_p8, %p4045_p4 }
 0x27c   : > { %p4043_p13 = pneg %p4042_p3 }
 0x27e   : > { %p4048_p10 = pnand %p4047_p9, %p4043_p13 }
 0x280   : > { %4051 = shalt.err (!%p4048_p10)
}
 0x281   : > { %s4104_s6 = smov 768   ;;  %s4105_s18 = smov 48  }
 0x282   : > { %3449 = dma.vmem_to_hbm [thread:$0]  (%p5081_p0), %s5002_s25, 9216, %s5000_s28, %s2997_s29, %s4104_s6, %s4104_s6, %s4105_s18  }
 0x283 PF: > { %p3473_p1 = scmp.ge.s32.totalorder %s4094_s15, 2  ;;  %s3026_s20 = sand.u32 1, %s4082_s12  }
 0x284   : > { %p5082_p2 = scmp.ne.s32.totalorder %s5061_s19, 0  ;;  %s3027_s16 = scalar_lea.sflag [#allocation4], %s3026_s20 }
 0x286   : > { %p3463_p6 = pnand %p3473_p1, %p5082_p2 }
 0x288   : > { %p3464_p11 = pneg %p3463_p6 }
 0x28a   : > { %4077 = dma.done.wait (%p3464_p11), %s3027_s16, 9216  }
 0x28b   : > { %4079 = vsyncadd (%p3464_p11), %s3027_s16, 4294958080  ;;  %p17_p5 = scmp.ge.s32.totalorder %s4197_s7, 6   ;;  %s5083_s12 = smov %s4086_s13 }
 0x28c   : > { %s5084_s13 = smov %s4090_s14  ;;  %s5085_s14 = smov %s4207_s10 }
 0x28d   : > { %s5086_s15 = smov %s4197_s7  ;;  %19 = sbr.rel (!%p17_p5) target bundleno = 6 (0x6), region = 85 }
 0x292   :  { %3032 = vsyncpa [#allocation3], 1 }
 0x293   :  { %3034 = vsyncpa [#allocation3 + $0x1], 1 }
 0x294   :  { %3035 = vsyncpa [#allocation6], 1 }
 0x295   :  { %3036 = vsyncpa [#allocation4], 1 }
 0x296   :  { %3038 = vsyncpa [#allocation4 + $0x1], 1 }

</bundles_post_ra>
